<compile_context>
chip_gen: v6e
topology: v6e:2x2x1
jax: 0.10.0
libtpu: 0.0.40
codegen_flags: <defaults>
</compile_context>

<pallas_src>
import jax
import jax.numpy as jnp
from jax.experimental import pallas as pl
from jax.experimental.pallas import tpu as pltpu

ALPHA = 0.2  # hardcoded inside STMGCN.forward


def _round_up(x, m):
    return ((x + m - 1) // m) * m


# ---------------------------------------------------------------------------
# Kernel
# ---------------------------------------------------------------------------
def stmgcn_kernel(adj1_ref, adj2_ref, x_ref, w1_ref, b1_ref, w2_ref, b2_ref,
                  p_ref, ct_ref, cn_ref, emb_ref, q_ref, ax1_ref, ax2_ref):
    k = pl.program_id(1)

    @pl.when(k == 0)
    def _():
        ax1_ref[...] = jnp.zeros_like(ax1_ref)
        ax2_ref[...] = jnp.zeros_like(ax2_ref)

    # --- streamed K-axis accumulation of (adj @ x); f32 accumulate on the MXU ---
    x = x_ref[...]                                                    # (tk, nfeat)
    ax1_ref[...] += jnp.dot(adj1_ref[...], x, preferred_element_type=jnp.float32)
    ax2_ref[...] += jnp.dot(adj2_ref[...], x, preferred_element_type=jnp.float32)

    # --- per-row-tile epilogue: weight matmuls, 2-view attention, Student-t head ---
    @pl.when(k == pl.num_programs(1) - 1)
    def _():
        emb1 = jnp.dot(ax1_ref[...], w1_ref[...],
                       preferred_element_type=jnp.float32) + b1_ref[...]
        emb2 = jnp.dot(ax2_ref[...], w2_ref[...],
                       preferred_element_type=jnp.float32) + b2_ref[...]

        # 2-view attention projection on VPU/XLU; 2-way softmax folded into a sigmoid.
        p_row = p_ref[...]                                            # (1, nhid1)
        s1 = jnp.sum(emb1 * p_row, axis=-1, keepdims=True)            # (tm, 1)
        s2 = jnp.sum(emb2 * p_row, axis=-1, keepdims=True)            # (tm, 1)
        beta1 = 1.0 / (1.0 + jnp.exp(s2 - s1))                        # sigmoid(s1 - s2)
        emb = beta1 * emb1 + (1.0 - beta1) * emb2                     # (tm, nhid1)
        emb_ref[...] = emb.astype(emb_ref.dtype)

        # Student-t soft assignment; d2 via ||e||^2 + ||c||^2 - 2 e.c  (cn precomputed).
        ct = ct_ref[...]                                              # (nhid1, nclass)
        ec = jnp.dot(emb, ct, preferred_element_type=jnp.float32)     # (tm, nclass)
        en = jnp.sum(emb * emb, axis=-1, keepdims=True)               # (tm, 1)
        d2 = jnp.maximum(en + cn_ref[...] - 2.0 * ec, 0.0)            # clamp cancellation
        q0 = 1.0 / (1.0 + d2 * (1.0 / ALPHA))
        # reference: q0 ** ((a+1)/2), then ** (a+1) / 2  ==  q0 ** ((a+1)^2/2) / 2
        expo = ((ALPHA + 1.0) / 2.0) * (ALPHA + 1.0)
        qp = jnp.exp(expo * jnp.log(q0)) * 0.5                        # q0 in (0, 1]
        qsum = jnp.sum(qp, axis=-1, keepdims=True)
        q_ref[...] = (qp * pl.reciprocal(qsum)).astype(q_ref.dtype)


# ---------------------------------------------------------------------------
# Sizing helpers (generation-aware, (8,128)-padding aware)
# ---------------------------------------------------------------------------
def _vmem_budget_bytes():
    """Generation-aware per-step VMEM budget (headroom below physical capacity)."""
    cap = 64 * 1024 * 1024  # conservative default = v7x per-TC VMEM
    try:
        info = pltpu.get_tpu_info()
        cap = int(getattr(info, "vmem_capacity_bytes", cap) or cap)
    except Exception:
        pass
    return int(min(0.70 * cap, 100 * 1024 * 1024))


def _block_vmem_bytes(tm, tk, nfeat, nhid1, nclass, adj_bytes, x_bytes):
    """Per-step VMEM working set incl. (8,128) tile padding and double buffering."""
    L = lambda c: _round_up(c, 128)   # lane padding
    S = lambda r: _round_up(r, 8)     # sublane padding
    f32 = 4
    b = 0
    b += 2 * 2 * S(tm) * L(tk) * adj_bytes        # adj1/adj2 tiles (double-buffered)
    b += 2 * S(tk) * L(nfeat) * x_bytes           # x K-tile (double-buffered)
    b += 2 * 2 * S(nfeat) * L(nhid1) * f32        # W1, W2
    b += 2 * 3 * S(1) * L(nhid1) * f32            # b1, b2, p rows
    b += 2 * S(1) * L(nclass) * f32               # cn row
    b += 2 * S(nhid1) * L(nclass) * f32           # cluster centers (transposed)
    b += 2 * S(tm) * L(nhid1) * f32               # emb output tile
    b += 2 * S(tm) * L(nclass) * f32              # q output tile
    b += 2 * S(tm) * L(nfeat) * f32               # ax1/ax2 accumulators (single)
    return b


def _divisor_tiles(n, step, cap):
    """Divisors of n that are multiples of `step`, <= cap, descending."""
    out = [d for d in range(step, min(n, cap) + 1, step) if n % d == 0]
    return sorted(out, reverse=True) or [n]


def _select_tiles(n_pad, nfeat, nhid1, nclass, adj_bytes, x_bytes, budget, tm, tk):
    tm_opts = [tm] if tm is not None else _divisor_tiles(n_pad, 8, 512)
    if tk is not None:
        tk_opts = [tk]
    elif n_pad > 512 and n_pad % 128 == 0:
        tk_opts = _divisor_tiles(n_pad, 128, 1024)
    else:
        tk_opts = [n_pad]
    for tm_c in tm_opts:                     # prefer the largest row tile that fits
        for tk_c in tk_opts:
            if _block_vmem_bytes(tm_c, tk_c, nfeat, nhid1, nclass,
                                 adj_bytes, x_bytes) <= budget:
                return tm_c, tk_c
    return tm_opts[-1], tk_opts[-1]


# ---------------------------------------------------------------------------
# Wrapper
# ---------------------------------------------------------------------------
def stmgcn_forward(x, adj1, adj2, w1, b1, w2, b2, p, cluster, *, tm=None, tk=None):
    N, nfeat = x.shape
    nhid1 = w1.shape[1]
    nclass = cluster.shape[0]

    adj_bytes = jnp.dtype(adj1.dtype).itemsize
    x_bytes = jnp.dtype(x.dtype).itemsize

    # Pad N so the row/K tiles divide evenly (no whole-array fallback).  Padded
    # adjacency rows/cols and x rows are zeros; padded output rows are sliced off.
    n_pad = _round_up(N, 8) if N <= 512 else _round_up(N, 128)

    budget = _vmem_budget_bytes()
    tm, tk = _select_tiles(n_pad, nfeat, nhid1, nclass, adj_bytes, x_bytes,
                           budget, tm, tk)
    assert n_pad % tm == 0 and n_pad % tk == 0, "tiles must divide padded N"
    assert tm % 8 == 0, "row tile must be a multiple of 8 (sublane)"
    assert tk == n_pad or tk % 128 == 0, "K tile must be lane-aligned or full extent"

    if n_pad != N:
        adj1 = jnp.pad(adj1, ((0, n_pad - N), (0, n_pad - N)))
        adj2 = jnp.pad(adj2, ((0, n_pad - N), (0, n_pad - N)))
        x = jnp.pad(x, ((0, n_pad - N), (0, 0)))

    # Small parameters in f32, laid out so the kernel never transposes in VMEM.
    w1 = w1.astype(jnp.float32)
    w2 = w2.astype(jnp.float32)
    b1 = b1.reshape(1, nhid1).astype(jnp.float32)
    b2 = b2.reshape(1, nhid1).astype(jnp.float32)
    p_row = p.reshape(1, nhid1).astype(jnp.float32)
    ct = cluster.T.astype(jnp.float32)                       # (nhid1, nclass)
    cn = jnp.sum(ct * ct, axis=0, keepdims=True)             # (1, nclass), hoisted

    grid = (n_pad // tm, n_pad // tk)

    in_specs = [
        pl.BlockSpec((tm, tk), lambda i, k: (i, k)),          # adj1 tile
        pl.BlockSpec((tm, tk), lambda i, k: (i, k)),          # adj2 tile
        pl.BlockSpec((tk, nfeat), lambda i, k: (k, 0)),       # x K-tile
        pl.BlockSpec((nfeat, nhid1), lambda i, k: (0, 0)),    # W1
        pl.BlockSpec((1, nhid1), lambda i, k: (0, 0)),        # b1
        pl.BlockSpec((nfeat, nhid1), lambda i, k: (0, 0)),    # W2
        pl.BlockSpec((1, nhid1), lambda i, k: (0, 0)),        # b2
        pl.BlockSpec((1, nhid1), lambda i, k: (0, 0)),        # attention projection p
        pl.BlockSpec((nhid1, nclass), lambda i, k: (0, 0)),   # cluster centers^T
        pl.BlockSpec((1, nclass), lambda i, k: (0, 0)),       # ||c_j||^2 (precomputed)
    ]
    out_specs = (
        pl.BlockSpec((tm, nhid1), lambda i, k: (i, 0)),       # emb (lane-dense, nhid1>=128)
        pl.BlockSpec((tm, nclass), lambda i, k: (i, 0)),      # q
    )
    # TODO(synk): if nclass ever grows large, emit q lane-dense (pad/transpose) to avoid
    # masked partial stores; at nclass=8 it is negligible next to the adjacency traffic.

    block_bytes = _block_vmem_bytes(tm, tk, nfeat, nhid1, nclass, adj_bytes, x_bytes)
    vmem_limit = int(min(max(int(1.25 * block_bytes), 16 * 1024 * 1024),
                         max(budget, block_bytes + (2 << 20))))

    cost = pl.CostEstimate(
        flops=int(2 * 2 * n_pad * n_pad * nfeat          # adj contractions
                  + 2 * 2 * n_pad * nfeat * nhid1        # weight matmuls
                  + 2 * n_pad * nhid1 * nclass           # cluster dot
                  + 16 * n_pad * nhid1),                 # epilogue elementwise
        transcendentals=int(n_pad * (1 + 2 * nclass)),
        bytes_accessed=int(2 * n_pad * n_pad * adj_bytes          # actual adj dtype
                           + n_pad * nfeat * x_bytes
                           + 4 * (2 * nfeat * nhid1 + 3 * nhid1 + nclass
                                  + nhid1 * nclass + n_pad * nhid1 + n_pad * nclass)),
    )

    emb, q = pl.pallas_call(
        stmgcn_kernel,
        out_shape=(jax.ShapeDtypeStruct((n_pad, nhid1), jnp.float32),
                   jax.ShapeDtypeStruct((n_pad, nclass), jnp.float32)),
        grid=grid,
        in_specs=in_specs,
        out_specs=out_specs,
        scratch_shapes=[pltpu.VMEM((tm, nfeat), jnp.float32),
                        pltpu.VMEM((tm, nfeat), jnp.float32)],
        compiler_params=pltpu.CompilerParams(
            dimension_semantics=("parallel", "arbitrary"),   # rows shard over v7x's 2 TCs
            vmem_limit_bytes=vmem_limit),
        cost_estimate=cost,
    )(adj1, adj2, x, w1, b1, w2, b2, p_row, ct, cn)

    if n_pad != N:
        emb = emb[:N]
        q = q[:N]
    return emb, q


# ---------------------------------------------------------------------------
# Pure-JAX reference (mirrors the PyTorch module op-for-op)
# ---------------------------------------------------------------------------
def reference_forward(x, adj1, adj2, w1, b1, w2, b2, p, cluster, alpha=ALPHA):
    emb1 = adj1 @ (x @ w1) + b1.reshape(-1)
    emb2 = adj2 @ (x @ w2) + b2.reshape(-1)
    emb = jnp.stack([emb1, emb2], axis=1)            # (N, 2, nhid1)
    w = emb @ p                                      # (N, 2, 1)
    beta = jax.nn.softmax(w, axis=1)
    z = (beta * emb).sum(axis=1)                     # (N, nhid1)
    d2 = jnp.sum((z[:, None, :] - cluster[None, :, :]) ** 2, axis=2)
    q = 1.0 / (1.0 + d2 / alpha)
    q = q ** ((alpha + 1.0) / 2.0)
    q = q ** (alpha + 1.0) / 2.0
    q = q / jnp.sum(q, axis=1, keepdims=True)
    return z, q


if __name__ == "__main__":
    # Small shapes consistent with STMGCN(nfeat, nclass, nhid1).  nhid1=128 keeps emb
    # lane-dense; tm=64 / tk=128 exercise both grid axes (grid = (4, 2)): the K-axis
    # accumulator and the pl.when epilogue.
    N, nfeat, nhid1, nclass = 256, 16, 128, 8

    key = jax.random.PRNGKey(0)
    kx, ka1, ka2, kw1, kb1, kw2, kb2, kp, kc = jax.random.split(key, 9)

    x = jax.random.normal(kx, (N, nfeat), dtype=jnp.float32)
    adj1 = jax.random.uniform(ka1, (N, N), dtype=jnp.float32)
    adj2 = jax.random.uniform(ka2, (N, N), dtype=jnp.float32)

    # GraphConvolution params: weight (in, out), bias (out,) kept as (1, out).
    w1 = jax.random.normal(kw1, (nfeat, nhid1), dtype=jnp.float32) * 0.1
    b1 = jax.random.normal(kb1, (1, nhid1), dtype=jnp.float32) * 0.1
    w2 = jax.random.normal(kw2, (nfeat, nhid1), dtype=jnp.float32) * 0.1
    b2 = jax.random.normal(kb2, (1, nhid1), dtype=jnp.float32) * 0.1
    # Attention projection: nn.Linear(nhid1, 1, bias=False).weight.T -> (nhid1, 1).
    p = jax.random.normal(kp, (nhid1, 1), dtype=jnp.float32) * 0.1
    # cluster_layer: Parameter(nclass, nhid1), xavier_normal_-style init.
    cluster = jax.random.normal(kc, (nclass, nhid1), dtype=jnp.float32) * 0.1

    # f32 path, correctness-checked against the reference.
    emb, q = stmgcn_forward(x, adj1, adj2, w1, b1, w2, b2, p, cluster, tm=64, tk=128)
    emb = jax.block_until_ready(emb)
    q = jax.block_until_ready(q)

    emb_ref, q_ref = reference_forward(x, adj1, adj2, w1, b1, w2, b2, p, cluster)

    assert emb.shape == (N, nhid1) and q.shape == (N, nclass)
    assert jnp.allclose(emb, emb_ref, atol=1e-3, rtol=1e-3), "emb mismatch vs reference"
    assert jnp.allclose(q, q_ref, atol=1e-4, rtol=1e-3), "q mismatch vs reference"
    assert jnp.allclose(jnp.sum(q, axis=1), 1.0, atol=1e-5), "q rows must sum to 1"

    # bf16-stored-adjacency path (the dominant HBM-traffic lever): the kernel consumes
    # adj/x in their stored dtype with f32 accumulation.  (In production the bf16 copies
    # would live in HBM permanently; the casts below only build the demo inputs.)
    emb_bf, q_bf = stmgcn_forward(x.astype(jnp.bfloat16),
                                  adj1.astype(jnp.bfloat16), adj2.astype(jnp.bfloat16),
                                  w1, b1, w2, b2, p, cluster, tm=64, tk=128)
    q_bf = jax.block_until_ready(q_bf)
    assert bool(jnp.all(jnp.isfinite(emb_bf))) and bool(jnp.all(jnp.isfinite(q_bf)))
    assert jnp.allclose(jnp.sum(q_bf, axis=1), 1.0, atol=1e-3), "bf16 q rows must sum to 1"

    print("KERNEL_OK")
</pallas_src>

<mosaic_0001>
module attributes {stable_mosaic.version = 11 : i64} {
  func.func @stmgcn_kernel(%arg0: i32, %arg1: i32, %arg2: memref<64x128xf32, #tpu.memory_space<vmem>>, %arg3: memref<64x128xf32, #tpu.memory_space<vmem>>, %arg4: memref<128x16xf32, #tpu.memory_space<vmem>>, %arg5: memref<16x128xf32, #tpu.memory_space<vmem>>, %arg6: memref<1x128xf32, #tpu.memory_space<vmem>>, %arg7: memref<16x128xf32, #tpu.memory_space<vmem>>, %arg8: memref<1x128xf32, #tpu.memory_space<vmem>>, %arg9: memref<1x128xf32, #tpu.memory_space<vmem>>, %arg10: memref<128x8xf32, #tpu.memory_space<vmem>>, %arg11: memref<1x8xf32, #tpu.memory_space<vmem>>, %arg12: memref<64x128xf32, #tpu.memory_space<vmem>>, %arg13: memref<64x8xf32, #tpu.memory_space<vmem>>, %arg14: memref<64x16xf32, #tpu.memory_space<vmem>>, %arg15: memref<64x16xf32, #tpu.memory_space<vmem>>) attributes {dimension_semantics = [#tpu.dimension_semantics<parallel>, #tpu.dimension_semantics<arbitrary>], iteration_bounds = array<i64: 4, 2>, scalar_prefetch = 0 : i64, scratch_operands = 2 : i64, tpu.core_type = #tpu.core_type<tc>, window_params = [{transform_indices = @transform_0, window_bounds = array<i64: 64, 128>}, {transform_indices = @transform_1, window_bounds = array<i64: 64, 128>}, {transform_indices = @transform_2, window_bounds = array<i64: 128, 16>}, {pipeline_mode = #tpu.pipeline_mode<synchronous>, transform_indices = @transform_3, window_bounds = array<i64: 16, 128>}, {pipeline_mode = #tpu.pipeline_mode<synchronous>, transform_indices = @transform_4, window_bounds = array<i64: 1, 128>}, {pipeline_mode = #tpu.pipeline_mode<synchronous>, transform_indices = @transform_5, window_bounds = array<i64: 16, 128>}, {pipeline_mode = #tpu.pipeline_mode<synchronous>, transform_indices = @transform_6, window_bounds = array<i64: 1, 128>}, {pipeline_mode = #tpu.pipeline_mode<synchronous>, transform_indices = @transform_7, window_bounds = array<i64: 1, 128>}, {pipeline_mode = #tpu.pipeline_mode<synchronous>, transform_indices = @transform_8, window_bounds = array<i64: 128, 8>}, {pipeline_mode = #tpu.pipeline_mode<synchronous>, transform_indices = @transform_9, window_bounds = array<i64: 1, 8>}, {transform_indices = @transform_10, window_bounds = array<i64: 64, 128>}, {transform_indices = @transform_11, window_bounds = array<i64: 64, 8>}]} {
    %c0_i32 = arith.constant 0 : i32
    %0 = arith.cmpi eq, %arg1, %c0_i32 : i32
    %1 = arith.extui %0 : i1 to i32
    %c0_i32_0 = arith.constant 0 : i32
    %2 = arith.cmpi ne, %1, %c0_i32_0 : i32
    scf.if %2 {
      %cst_16 = arith.constant 0.000000e+00 : f32
      %17 = vector.broadcast %cst_16 : f32 to vector<64x16xf32>
      %c0_17 = arith.constant 0 : index
      %c0_18 = arith.constant 0 : index
      %18 = vector.load %arg14[%c0_17, %c0_18] : memref<64x16xf32, #tpu.memory_space<vmem>>, vector<64x16xf32>
      tpu.vector_store %arg14[%c0_17, %c0_18], %17 {strides = array<i32>} : memref<64x16xf32, #tpu.memory_space<vmem>>, vector<64x16xf32>,
      %cst_19 = arith.constant 0.000000e+00 : f32
      %19 = vector.broadcast %cst_19 : f32 to vector<64x16xf32>
      %c0_20 = arith.constant 0 : index
      %c0_21 = arith.constant 0 : index
      %20 = vector.load %arg15[%c0_20, %c0_21] : memref<64x16xf32, #tpu.memory_space<vmem>>, vector<64x16xf32>
      tpu.vector_store %arg15[%c0_20, %c0_21], %19 {strides = array<i32>} : memref<64x16xf32, #tpu.memory_space<vmem>>, vector<64x16xf32>,
    } else {
    }
    %c0 = arith.constant 0 : index
    %c0_1 = arith.constant 0 : index
    %3 = vector.load %arg4[%c0, %c0_1] : memref<128x16xf32, #tpu.memory_space<vmem>>, vector<128x16xf32>
    %c0_2 = arith.constant 0 : index
    %c0_3 = arith.constant 0 : index
    %4 = vector.load %arg14[%c0_2, %c0_3] : memref<64x16xf32, #tpu.memory_space<vmem>>, vector<64x16xf32>
    %c0_4 = arith.constant 0 : index
    %c0_5 = arith.constant 0 : index
    %5 = vector.load %arg2[%c0_4, %c0_5] : memref<64x128xf32, #tpu.memory_space<vmem>>, vector<64x128xf32>
    %cst = arith.constant dense<0.000000e+00> : vector<64x16xf32>
    %6 = tpu.matmul %5, %3, %cst {dimension_numbers = #tpu.dot_dimension_numbers<[1], [0], [0], [1], [0, 0, 1, 1], [], []>} : vector<64x128xf32>, vector<128x16xf32>, vector<64x16xf32> -> vector<64x16xf32>
    %7 = arith.addf %4, %6 : vector<64x16xf32>
    %c0_6 = arith.constant 0 : index
    %c0_7 = arith.constant 0 : index
    %8 = vector.load %arg14[%c0_6, %c0_7] : memref<64x16xf32, #tpu.memory_space<vmem>>, vector<64x16xf32>
    tpu.vector_store %arg14[%c0_6, %c0_7], %7 {strides = array<i32>} : memref<64x16xf32, #tpu.memory_space<vmem>>, vector<64x16xf32>,
    %c0_8 = arith.constant 0 : index
    %c0_9 = arith.constant 0 : index
    %9 = vector.load %arg15[%c0_8, %c0_9] : memref<64x16xf32, #tpu.memory_space<vmem>>, vector<64x16xf32>
    %c0_10 = arith.constant 0 : index
    %c0_11 = arith.constant 0 : index
    %10 = vector.load %arg3[%c0_10, %c0_11] : memref<64x128xf32, #tpu.memory_space<vmem>>, vector<64x128xf32>
    %cst_12 = arith.constant dense<0.000000e+00> : vector<64x16xf32>
    %11 = tpu.matmul %10, %3, %cst_12 {dimension_numbers = #tpu.dot_dimension_numbers<[1], [0], [0], [1], [0, 0, 1, 1], [], []>} : vector<64x128xf32>, vector<128x16xf32>, vector<64x16xf32> -> vector<64x16xf32>
    %12 = arith.addf %9, %11 : vector<64x16xf32>
    %c0_13 = arith.constant 0 : index
    %c0_14 = arith.constant 0 : index
    %13 = vector.load %arg15[%c0_13, %c0_14] : memref<64x16xf32, #tpu.memory_space<vmem>>, vector<64x16xf32>
    tpu.vector_store %arg15[%c0_13, %c0_14], %12 {strides = array<i32>} : memref<64x16xf32, #tpu.memory_space<vmem>>, vector<64x16xf32>,
    %c1_i32 = arith.constant 1 : i32
    %14 = arith.cmpi eq, %arg1, %c1_i32 : i32
    %15 = arith.extui %14 : i1 to i32
    %c0_i32_15 = arith.constant 0 : i32
    %16 = arith.cmpi ne, %15, %c0_i32_15 : i32
    scf.if %16 {
      %c0_16 = arith.constant 0 : index
      %c0_17 = arith.constant 0 : index
      %17 = vector.load %arg14[%c0_16, %c0_17] : memref<64x16xf32, #tpu.memory_space<vmem>>, vector<64x16xf32>
      %c0_18 = arith.constant 0 : index
      %c0_19 = arith.constant 0 : index
      %18 = vector.load %arg5[%c0_18, %c0_19] : memref<16x128xf32, #tpu.memory_space<vmem>>, vector<16x128xf32>
      %cst_20 = arith.constant dense<0.000000e+00> : vector<64x128xf32>
      %19 = tpu.matmul %17, %18, %cst_20 {dimension_numbers = #tpu.dot_dimension_numbers<[1], [0], [0], [1], [0, 0, 1, 1], [], []>} : vector<64x16xf32>, vector<16x128xf32>, vector<64x128xf32> -> vector<64x128xf32>
      %c0_21 = arith.constant 0 : index
      %c0_22 = arith.constant 0 : index
      %20 = vector.load %arg6[%c0_21, %c0_22] : memref<1x128xf32, #tpu.memory_space<vmem>>, vector<1x128xf32>
      %21 = vector.broadcast %20 : vector<1x128xf32> to vector<64x128xf32>
      %22 = arith.addf %19, %21 : vector<64x128xf32>
      %c0_23 = arith.constant 0 : index
      %c0_24 = arith.constant 0 : index
      %23 = vector.load %arg15[%c0_23, %c0_24] : memref<64x16xf32, #tpu.memory_space<vmem>>, vector<64x16xf32>
      %c0_25 = arith.constant 0 : index
      %c0_26 = arith.constant 0 : index
      %24 = vector.load %arg7[%c0_25, %c0_26] : memref<16x128xf32, #tpu.memory_space<vmem>>, vector<16x128xf32>
      %cst_27 = arith.constant dense<0.000000e+00> : vector<64x128xf32>
      %25 = tpu.matmul %23, %24, %cst_27 {dimension_numbers = #tpu.dot_dimension_numbers<[1], [0], [0], [1], [0, 0, 1, 1], [], []>} : vector<64x16xf32>, vector<16x128xf32>, vector<64x128xf32> -> vector<64x128xf32>
      %c0_28 = arith.constant 0 : index
      %c0_29 = arith.constant 0 : index
      %26 = vector.load %arg8[%c0_28, %c0_29] : memref<1x128xf32, #tpu.memory_space<vmem>>, vector<1x128xf32>
      %27 = vector.broadcast %26 : vector<1x128xf32> to vector<64x128xf32>
      %28 = arith.addf %25, %27 : vector<64x128xf32>
      %c0_30 = arith.constant 0 : index
      %c0_31 = arith.constant 0 : index
      %29 = vector.load %arg9[%c0_30, %c0_31] : memref<1x128xf32, #tpu.memory_space<vmem>>, vector<1x128xf32>
      %30 = vector.broadcast %29 : vector<1x128xf32> to vector<64x128xf32>
      %31 = arith.mulf %22, %30 : vector<64x128xf32>
      %cst_32 = arith.constant dense<0.000000e+00> : vector<64xf32>
      %32 = vector.multi_reduction <add>, %31, %cst_32 [1] : vector<64x128xf32> to vector<64xf32>
      %33 = vector.shape_cast %32 : vector<64xf32> to vector<64x1xf32>
      %34 = vector.broadcast %29 : vector<1x128xf32> to vector<64x128xf32>
      %35 = arith.mulf %28, %34 : vector<64x128xf32>
      %cst_33 = arith.constant dense<0.000000e+00> : vector<64xf32>
      %36 = vector.multi_reduction <add>, %35, %cst_33 [1] : vector<64x128xf32> to vector<64xf32>
      %37 = vector.shape_cast %36 : vector<64xf32> to vector<64x1xf32>
      %38 = arith.subf %37, %33 : vector<64x1xf32>
      %39 = math.exp %38 : vector<64x1xf32>
      %cst_34 = arith.constant 1.000000e+00 : f32
      %40 = vector.broadcast %cst_34 : f32 to vector<64x1xf32>
      %41 = arith.addf %40, %39 : vector<64x1xf32>
      %cst_35 = arith.constant 1.000000e+00 : f32
      %42 = vector.broadcast %cst_35 : f32 to vector<64x1xf32>
      %43 = arith.divf %42, %41 : vector<64x1xf32>
      %44 = vector.broadcast %43 : vector<64x1xf32> to vector<64x128xf32>
      %45 = arith.mulf %44, %22 : vector<64x128xf32>
      %cst_36 = arith.constant 1.000000e+00 : f32
      %46 = vector.broadcast %cst_36 : f32 to vector<64x1xf32>
      %47 = arith.subf %46, %43 : vector<64x1xf32>
      %48 = vector.broadcast %47 : vector<64x1xf32> to vector<64x128xf32>
      %49 = arith.mulf %48, %28 : vector<64x128xf32>
      %50 = arith.addf %45, %49 : vector<64x128xf32>
      %c0_37 = arith.constant 0 : index
      %c0_38 = arith.constant 0 : index
      %51 = vector.load %arg12[%c0_37, %c0_38] : memref<64x128xf32, #tpu.memory_space<vmem>>, vector<64x128xf32>
      tpu.vector_store %arg12[%c0_37, %c0_38], %50 {strides = array<i32>} : memref<64x128xf32, #tpu.memory_space<vmem>>, vector<64x128xf32>,
      %c0_39 = arith.constant 0 : index
      %c0_40 = arith.constant 0 : index
      %52 = vector.load %arg10[%c0_39, %c0_40] : memref<128x8xf32, #tpu.memory_space<vmem>>, vector<128x8xf32>
      %cst_41 = arith.constant dense<0.000000e+00> : vector<64x8xf32>
      %53 = tpu.matmul %50, %52, %cst_41 {dimension_numbers = #tpu.dot_dimension_numbers<[1], [0], [0], [1], [0, 0, 1, 1], [], []>} : vector<64x128xf32>, vector<128x8xf32>, vector<64x8xf32> -> vector<64x8xf32>
      %54 = arith.mulf %50, %50 : vector<64x128xf32>
      %cst_42 = arith.constant dense<0.000000e+00> : vector<64xf32>
      %55 = vector.multi_reduction <add>, %54, %cst_42 [1] : vector<64x128xf32> to vector<64xf32>
      %56 = vector.shape_cast %55 : vector<64xf32> to vector<64x1xf32>
      %c0_43 = arith.constant 0 : index
      %c0_44 = arith.constant 0 : index
      %57 = vector.load %arg11[%c0_43, %c0_44] : memref<1x8xf32, #tpu.memory_space<vmem>>, vector<1x8xf32>
      %58 = vector.broadcast %56 : vector<64x1xf32> to vector<64x8xf32>
      %59 = vector.broadcast %57 : vector<1x8xf32> to vector<64x8xf32>
      %60 = arith.addf %58, %59 : vector<64x8xf32>
      %cst_45 = arith.constant 2.000000e+00 : f32
      %61 = vector.broadcast %cst_45 : f32 to vector<64x8xf32>
      %62 = arith.mulf %61, %53 : vector<64x8xf32>
      %63 = arith.subf %60, %62 : vector<64x8xf32>
      %cst_46 = arith.constant 0.000000e+00 : f32
      %64 = vector.broadcast %cst_46 : f32 to vector<64x8xf32>
      %65 = arith.maximumf %63, %64 : vector<64x8xf32>
      %cst_47 = arith.constant 5.000000e+00 : f32
      %66 = vector.broadcast %cst_47 : f32 to vector<64x8xf32>
      %67 = arith.mulf %65, %66 : vector<64x8xf32>
      %cst_48 = arith.constant 1.000000e+00 : f32
      %68 = vector.broadcast %cst_48 : f32 to vector<64x8xf32>
      %69 = arith.addf %68, %67 : vector<64x8xf32>
      %cst_49 = arith.constant 1.000000e+00 : f32
      %70 = vector.broadcast %cst_49 : f32 to vector<64x8xf32>
      %71 = arith.divf %70, %69 : vector<64x8xf32>
      %72 = math.log %71 : vector<64x8xf32>
      %cst_50 = arith.constant 7.200000e-01 : f32
      %73 = vector.broadcast %cst_50 : f32 to vector<64x8xf32>
      %74 = arith.mulf %73, %72 : vector<64x8xf32>
      %75 = math.exp %74 : vector<64x8xf32>
      %cst_51 = arith.constant 5.000000e-01 : f32
      %76 = vector.broadcast %cst_51 : f32 to vector<64x8xf32>
      %77 = arith.mulf %75, %76 : vector<64x8xf32>
      %cst_52 = arith.constant dense<0.000000e+00> : vector<64xf32>
      %78 = vector.multi_reduction <add>, %77, %cst_52 [1] : vector<64x8xf32> to vector<64xf32>
      %79 = vector.shape_cast %78 : vector<64xf32> to vector<64x1xf32>
      %80 = tpu.reciprocal %79 : vector<64x1xf32> -> vector<64x1xf32>
      %81 = vector.broadcast %80 : vector<64x1xf32> to vector<64x8xf32>
      %82 = arith.mulf %77, %81 : vector<64x8xf32>
      %c0_53 = arith.constant 0 : index
      %c0_54 = arith.constant 0 : index
      %83 = vector.load %arg13[%c0_53, %c0_54] : memref<64x8xf32, #tpu.memory_space<vmem>>, vector<64x8xf32>
      tpu.vector_store %arg13[%c0_53, %c0_54], %82 {strides = array<i32>} : memref<64x8xf32, #tpu.memory_space<vmem>>, vector<64x8xf32>,
    } else {
    }
    return
  }
  func.func @transform_0(%arg0: i32, %arg1: i32) -> (i32, i32) {
    %c0_i32 = arith.constant 0 : i32
    return %arg0, %arg1 : i32, i32
  }
  func.func @transform_1(%arg0: i32, %arg1: i32) -> (i32, i32) {
    %c0_i32 = arith.constant 0 : i32
    return %arg0, %arg1 : i32, i32
  }
  func.func @transform_2(%arg0: i32, %arg1: i32) -> (i32, i32) {
    %c0_i32 = arith.constant 0 : i32
    %c0_i32_0 = arith.constant 0 : i32
    return %arg1, %c0_i32 : i32, i32
  }
  func.func @transform_3(%arg0: i32, %arg1: i32) -> (i32, i32) {
    %c0_i32 = arith.constant 0 : i32
    %c0_i32_0 = arith.constant 0 : i32
    %c0_i32_1 = arith.constant 0 : i32
    return %c0_i32, %c0_i32_0 : i32, i32
  }
  func.func @transform_4(%arg0: i32, %arg1: i32) -> (i32, i32) {
    %c0_i32 = arith.constant 0 : i32
    %c0_i32_0 = arith.constant 0 : i32
    %c0_i32_1 = arith.constant 0 : i32
    return %c0_i32, %c0_i32_0 : i32, i32
  }
  func.func @transform_5(%arg0: i32, %arg1: i32) -> (i32, i32) {
    %c0_i32 = arith.constant 0 : i32
    %c0_i32_0 = arith.constant 0 : i32
    %c0_i32_1 = arith.constant 0 : i32
    return %c0_i32, %c0_i32_0 : i32, i32
  }
  func.func @transform_6(%arg0: i32, %arg1: i32) -> (i32, i32) {
    %c0_i32 = arith.constant 0 : i32
    %c0_i32_0 = arith.constant 0 : i32
    %c0_i32_1 = arith.constant 0 : i32
    return %c0_i32, %c0_i32_0 : i32, i32
  }
  func.func @transform_7(%arg0: i32, %arg1: i32) -> (i32, i32) {
    %c0_i32 = arith.constant 0 : i32
    %c0_i32_0 = arith.constant 0 : i32
    %c0_i32_1 = arith.constant 0 : i32
    return %c0_i32, %c0_i32_0 : i32, i32
  }
  func.func @transform_8(%arg0: i32, %arg1: i32) -> (i32, i32) {
    %c0_i32 = arith.constant 0 : i32
    %c0_i32_0 = arith.constant 0 : i32
    %c0_i32_1 = arith.constant 0 : i32
    return %c0_i32, %c0_i32_0 : i32, i32
  }
  func.func @transform_9(%arg0: i32, %arg1: i32) -> (i32, i32) {
    %c0_i32 = arith.constant 0 : i32
    %c0_i32_0 = arith.constant 0 : i32
    %c0_i32_1 = arith.constant 0 : i32
    return %c0_i32, %c0_i32_0 : i32, i32
  }
  func.func @transform_10(%arg0: i32, %arg1: i32) -> (i32, i32) {
    %c0_i32 = arith.constant 0 : i32
    %c0_i32_0 = arith.constant 0 : i32
    return %arg0, %c0_i32 : i32, i32
  }
  func.func @transform_11(%arg0: i32, %arg1: i32) -> (i32, i32) {
    %c0_i32 = arith.constant 0 : i32
    %c0_i32_0 = arith.constant 0 : i32
    return %arg0, %c0_i32 : i32, i32
  }
}

</mosaic_0001>

<bundles_post_ra>
// kernel: tpu_custom_call.1
= control target key start
LH: loop header
LB: loop body
LE: loop exit
PB: predicated region body
PF: predicated region fallthrough
CT: control target
= control target key end

     0   :  { %s3054_s0 = inlined_call_operand.hbm [shape: f32[256,256], index: 0, kind: input, shape index: {}]   ;;  %s3055_s1 = inlined_call_operand.hbm [shape: f32[256,256], index: 1, kind: input, shape index: {}]   ;;  %s3056_s2 = inlined_call_operand.vmem [shape: f32[256,16], index: 2, kind: input, shape index: {}]   ;;  %s3057_s3 = inlined_call_operand.vmem [shape: f32[16,128], index: 3, kind: input, shape index: {}]   ;;  %s3058_s4 = inlined_call_operand.vmem [shape: f32[1,128], index: 4, kind: input, shape index: {}]   ;;  %s3059_s5 = inlined_call_operand.vmem [shape: f32[16,128], index: 5, kind: input, shape index: {}]   ;;  %s3060_s6 = inlined_call_operand.vmem [shape: f32[1,128], index: 6, kind: input, shape index: {}]   ;;  %s3061_s7 = inlined_call_operand.vmem [shape: f32[1,128], index: 7, kind: input, shape index: {}]   ;;  %s3062_s8 = inlined_call_operand.vmem [shape: f32[128,8], index: 8, kind: input, shape index: {}]   ;;  %s3063_s9 = inlined_call_operand.vmem [shape: f32[1,8], index: 9, kind: input, shape index: {}]   ;;  %s3064_s10 = inlined_call_operand.hbm [shape: f32[256,128], index: 10, kind: output, shape index: {0}]   ;;  %s3065_s11 = inlined_call_operand.vmem [shape: f32[256,8], index: 11, kind: output, shape index: {1}]  }
   0x1   :  { %3077 = sst [smem:[#allocation23_spill]] %s3054_s0 }
   0x2   :  { %3078 = sst [smem:[#allocation24_spill]] %s3060_s6 }
   0x3   :  { %3079 = sst [smem:[#allocation25_spill]] %s3061_s7 }
   0x4   :  { %3080 = sst [smem:[#allocation26_spill]] %s3062_s8 }
   0x5   :  { %3081 = sst [smem:[#allocation27_spill]] %s3063_s9 }
   0x6   :  { %3082 = sst [smem:[#allocation28_spill]] %s3064_s10 }
   0x7   :  { %17 = vsyncpa [#allocation5], 0 }
   0x8   :  { %19 = vsyncpa [#allocation5 + $0x1], 0 }
   0x9   :  { %20 = vsyncpa [#allocation8], 0 }
   0xa   :  { %22 = vsyncpa [#allocation8 + $0x1], 0 }
   0xb   :  { %23 = vsyncpa [#allocation6], 0 }
   0xc   :  { %25 = vsyncpa [#allocation6 + $0x1], 0  ;;  %s2537_s17 = smov 0   ;;  %s2539_s18 = smov 0  }
   0xd   :  { %s2541_s19 = smov 0   ;;  %s2543_s20 = smov 0  }
   0xe   :  { %s2545_s21 = smov 0   ;;  %s2547_s22 = smov 0  }
   0xf   :  { %s2549_s23 = smov 0   ;;  %s2551_s24 = smov 0  }
  0x10   :  { %s2553_s25 = smov 0   ;;  %s2555_s26 = smov 0  }
  0x11   :  { %s2557_s27 = smov 0  }
  0x12 LB: > { %3083 = sst [smem:[#allocation13_spill]] %s2426_s17  ;;  %s1739_s28 = sadd.s32 4294967295, %s2466_s27   ;;  %s2466_s27 = sphi %s2557_s27, %s31_s27   ;;  %s2462_s26 = sphi %s2555_s26, %s3122_s26   ;;  %s2458_s25 = sphi %s2553_s25, %s3115_s25   ;;  %s2454_s24 = sphi %s2551_s24, %s3114_s24   ;;  %s2450_s23 = sphi %s2549_s23, %s3121_s23   ;;  %s2446_s22 = sphi %s2547_s22, %s3112_s22   ;;  %s2442_s21 = sphi %s2545_s21, %s3120_s21   ;;  %s2438_s20 = sphi %s2543_s20, %s3119_s20   ;;  %s2434_s19 = sphi %s2541_s19, %s3110_s19   ;;  %s2430_s18 = sphi %s2539_s18, %s3118_s18   ;;  %s2426_s17 = sphi %s2537_s17, %s3117_s17  }
  0x13   : > { %3084 = sst [smem:[#allocation14_spill]] %s2434_s19  ;;  %s1740_s29 = sadd.s32 4294967294, %s2466_s27  }
  0x14   : > { %3085 = sst [smem:[#allocation15_spill]] %s2446_s22  ;;  %s40_s30 = sadd.s32 1, %s2458_s25 }
  0x15   : > { %3086 = sst [smem:[#allocation16_spill]] %s2458_s25  ;;  %s43_s12 = sadd.s32 1, %s2462_s26 }
  0x16   : > { %3087 = sst [smem:[#allocation17_spill]] %s2462_s26  ;;  %p41_p0 = scmp.ge.s32.totalorder %s40_s30, 2 }
  0x17   : > { %s52_s13 = sadd.s32 1, %s2446_s22  ;;  %p59_p1 = scmp.ne.s32.totalorder %s2446_s22, %s2442_s21 }
  0x18   : > { %p60_p2 = scmp.eq.s32.totalorder %s2466_s27, 0  ;;  %s3124_s30 = smov (%p41_p0, %s40_s30), 0 }
  0x19   : > { %3088 = sst [smem:[#allocation18_spill]] %s3124_s30  ;;  %s3126_s12 = smov (!%p41_p0, %s43_s12), %s2462_s26 }
  0x1a   : > { %s48_s14 = ssub.s32 %s2458_s25, %s3124_s30  ;;  %p2603_p3 = por %p60_p2, %p59_p1 }
  0x1b   : > { %p45_p4 = scmp.ge.s32.totalorder %s3126_s12, 4  ;;  %p65_p5 = scmp.ne.s32.totalorder %s2442_s21, %s2438_s20 }
  0x1c   : > { %p66_p6 = scmp.eq.s32.totalorder %s1739_s28, 0  ;;  %s279_s16 = sadd.s32 1, %s2434_s19 }
  0x1d   : > { %s3128_s12 = smov (%p45_p4, %s3126_s12), 0  ;;  %p289_p8 = scmp.ne.s32.totalorder %s2434_s19, %s2430_s18 }
  0x1e   : > { %3090 = sst [smem:[#allocation19_spill]] %s3128_s12  ;;  %p2611_p7 = por %p66_p6, %p65_p5 }
  0x1f   : > { %s47_s30 = ssub.s32 %s2462_s26, %s3128_s12  ;;  %p290_p9 = scmp.eq.s32.totalorder %s1739_s28, 7 }
  0x20   : > { %s49_s9 = sor.u32 %s48_s14, %s47_s30  ;;  %p277_p10 = scmp.eq.s32.totalorder %s47_s30, 0 }
  0x21   : > { %p50_p11 = scmp.eq.s32.totalorder %s49_s9, 0  ;;  %p2619_p12 = por %p290_p9, %p289_p8 }
  0x22   : > { %s2624_s8 = scalar_select %p277_p10, %s2434_s19, %s279_s16  }
  0x23   : > { %s2627_s7 = scalar_select %p50_p11, %s2446_s22, %s52_s13  }
  0x24   : > { %3093 = sst [smem:[#allocation20_spill]] %s2624_s8  ;;  %p295_p13 = scmp.ne.s32.totalorder %s2430_s18, %s2426_s17 }
  0x25   : > { %3094 = sst [smem:[#allocation21_spill]] %s2627_s7  ;;  %p296_p0 = scmp.eq.s32.totalorder %s1740_s29, 7 }
  0x26   : > { %p2094_p1 = scmp.lt.s32.totalorder %s2466_s27, 8  ;;  %s2637_s28 = sand.u32 1, %s2446_s22  }
  0x27   : > { %p2632_p2 = por %p296_p0, %p295_p13  ;;  %s3072_s9 = sshll.u32 %s2637_s28, 6 }
  0x28   : > { %s1786_s30 = sshll.u32 %s2462_s26, 4  ;;  %s367_s13 = scalar_lea.vmem [#allocation4], %s3072_s9 }
  0x29   : > { %s3095_s6 = scalar_select %p2632_p2, 1, 0 }
  0x2a   : > { %s2642_s14 = sadd.s32 %s2458_s25, %s1786_s30  ;;  %s376_s16 = sshll.u32 %s367_s13, 4  ;;  %s377_s16 = int_to_ptr.vmem [resolvable:$true] %s376_s16 }
  0x2b   : > { %3096 = sst [smem:[#allocation22_spill]] %s3095_s6  ;;  %s1746_s12 = sshll.u32 %s2642_s14, 7 }
  0x2c   : > { %s3097_s0 = sld [smem:[#allocation23_spill]]  ;;  %p2652_p4 = pnand %p2094_p1, %p2603_p3 }
  0x2d   : > { %s364_s26 = scalar_lea.sflag [#allocation5], %s2637_s28  ;;  %s2299_s30 = scalar_lea.vmem %s377_s16, 1024 }
  0x2e   : > { %p2288_p5 = pneg %p2652_p4  ;;  %p2300_p6 = scmp.ne.s32.totalorder %s377_s16, %s2299_s30 }
  0x2f   : > { %s2468_s14 = smov [#allocation4]  }
  0x30   : > { %p2302_p8 = pnand %p2300_p6, %p2288_p5  ;;  %s2304_s13 = sshll.u32 %s2468_s14, 4  ;;  %s2305_s13 = int_to_ptr.vmem [resolvable:$false] %s2304_s13 }
  0x31   : > { %s2306_s7 = scalar_lea.vmem %s2305_s13, 2048  ;;  %p2307_p10 = scmp.lt.s32.totalorder %s377_s16, %s2305_s13 }
  0x32   : > { %s375_s8 = scalar_lea.hbm %s3097_s0, %s1746_s12  ;;  %p2303_p9 = pneg %p2302_p8 }
  0x33   : > { %p2308_p3 = scmp.lt.s32.totalorder %s2306_s7, %s2299_s30 }
  0x35   : > { %p2309_p11 = por %p2308_p3, %p2307_p10 }
  0x37   : > { %p2310_p13 = pnand %p2309_p11, %p2303_p9 }
  0x39   : > { %2313 = shalt.err (!%p2310_p13)
}
  0x3a   : > { %s2469_s15 = smov 256   ;;  %s2470_s29 = smov 128  }
  0x3b   : > { %s2471_s9 = smov 8   ;;  %p1751_p0 = scmp.ge.s32.totalorder %s2466_s27, 1 }
  0x3c   : > { %2086 = dma.hbm_to_vmem [thread:$0]  (!%p2652_p4), %s375_s8, 1024, %s377_s16, %s364_s26, %s2469_s15, %s2470_s29, %s2471_s9  }
  0x3d   : > { %p416_p1 = scmp.lt.s32.totalorder %s2466_s27, 9  ;;  %s398_s7 = scalar_lea.hbm %s3055_s1, %s1746_s12 }
  0x3e   : > { %s3100_s0 = sshll.u32 %s2637_s28, 6  ;;  %s387_s6 = scalar_lea.sflag [#allocation8], %s2637_s28 }
  0x3f   : > { %p2667_p6 = pnand %p1751_p0, %p416_p1  ;;  %s390_s25 = scalar_lea.vmem [#allocation7], %s3100_s0 }
  0x40   : > { %s399_s19 = sshll.u32 %s390_s25, 4  ;;  %s2472_s8 = smov [#allocation7]   ;;  %s400_s19 = int_to_ptr.vmem [resolvable:$true] %s399_s19 }
  0x41   : > { %s2327_s17 = scalar_lea.vmem %s400_s19, 1024  ;;  %s2332_s26 = sshll.u32 %s2472_s8, 4  ;;  %s2333_s26 = int_to_ptr.vmem [resolvable:$false] %s2332_s26 }
  0x42   : > { %p2328_p8 = scmp.ne.s32.totalorder %s400_s19, %s2327_s17  ;;  %s2334_s16 = scalar_lea.vmem %s2333_s26, 2048 }
  0x43   : > { %p2335_p3 = scmp.lt.s32.totalorder %s400_s19, %s2333_s26  ;;  %p2336_p11 = scmp.lt.s32.totalorder %s2334_s16, %s2327_s17 }
  0x44   : > { %p2330_p9 = pnand %p2328_p8, %p2288_p5 }
  0x45   : > { %p2337_p13 = por %p2336_p11, %p2335_p3 }
  0x46   : > { %p2331_p10 = pneg %p2330_p9 }
  0x48   : > { %p2338_p0 = pnand %p2337_p13, %p2331_p10 }
  0x4a   : > { %2341 = shalt.err (!%p2338_p0)
}
  0x4b   : > { %2089 = dma.hbm_to_vmem [thread:$0]  (!%p2652_p4), %s398_s7, 1024, %s400_s19, %s387_s6, %s2469_s15, %s2470_s29, %s2471_s9  }
  0x4c   : > { %420 = sbr.rel (%p2667_p6) target bundleno = 1201 (0x4b1), region = 60  ;;  %s422_s0 = sand.u32 (!%p2667_p6), 1, %s2442_s21  }
  0x4d   : > { %s1752_s25 = sshll.u32 (!%p2667_p6), %s422_s0, 6  ;;  %s423_s12 = scalar_lea.sflag (!%p2667_p6), [#allocation5], %s422_s0 }
  0x4e   : > { %s2686_s28 = scalar_lea.vmem (!%p2667_p6), [#allocation4], %s1752_s25 }
  0x51   : > { %2413 = dma.done.wait (%p2611_p7), %s423_s12, 1024  }
  0x52   : > { %2415 = vsyncadd (%p2611_p7), %s423_s12, 4294966272  ;;  %s432_s17 = scalar_lea.sflag [#allocation8], %s422_s0  ;;  %s2692_s22 = scalar_lea.vmem [#allocation7], %s1752_s25 }
  0x53   : > { %2417 = dma.done.wait (%p2611_p7), %s432_s17, 1024  }
  0x54   : > { %2419 = vsyncadd (%p2611_p7), %s432_s17, 4294966272  ;;  %s479_s6 = sand.u32 1, %s2430_s18   ;;  %s1755_s19 = sshll.u32 %s2450_s23, 4 }
  0x55   : > { %s1754_s9 = sshll.u32 %s479_s6, 6  ;;  %p492_p4 = scmp.lt.s32.totalorder %s1755_s19, 31 }
  0x56   : > { %s1757_s15 = sshll.u32 %s2454_s24, 3  ;;  %s2713_s16 = scalar_lea.vmem [#allocation9], %s1754_s9 }
  0x57   : > { %s3130_s19 = smov (!%p492_p4, %s1755_s19), 31  ;;  %p499_p5 = scmp.lt.s32.totalorder %s1757_s15, 31 }
  0x58   : > { %s1756_s29 = sshll.u32 %s3130_s19, 3  ;;  %p1759_p7 = scmp.ne.s32.totalorder %s2450_s23, 0 }
  0x59   : > { %s2706_s13 = scalar_lea.vmem %s3056_s2, %s1756_s29  ;;  %s3132_s15 = smov (!%p499_p5, %s1757_s15), 31 }
  0x5a   : > { %s1758_s10 = sshll.u32 %s3132_s15, 3  ;;  %507 = sbr.rel (%p1759_p7) target bundleno = 104 (0x68), region = 72 }
  0x5b   : > { %s2711_s26 = scalar_lea.vmem %s3065_s11, %s1758_s10 }
  0x5f   : > { %vm508_vm0 = vcmask 130048   ;;  %v2473_v0 = vmov 0.0  }
  0x60   : > { %509 = vst.msk [vmem:[#allocation2] sm:$0xff] %vm508_vm0, %v2473_v0  ;;  %510 = vst.msk [vmem:[#allocation2 + $0x8] sm:$0xff] %vm508_vm0, %v2473_v0 }
  0x61   : > { %511 = vst.msk [vmem:[#allocation2 + $0x10] sm:$0xff] %vm508_vm0, %v2473_v0  ;;  %512 = vst.msk [vmem:[#allocation2 + $0x18] sm:$0xff] %vm508_vm0, %v2473_v0 }
  0x62   : > { %513 = vst.msk [vmem:[#allocation2 + $0x20] sm:$0xff] %vm508_vm0, %v2473_v0  ;;  %514 = vst.msk [vmem:[#allocation2 + $0x28] sm:$0xff] %vm508_vm0, %v2473_v0 }
  0x63   : > { %515 = vst.msk [vmem:[#allocation2 + $0x30] sm:$0xff] %vm508_vm0, %v2473_v0  ;;  %516 = vst.msk [vmem:[#allocation2 + $0x38] sm:$0xff] %vm508_vm0, %v2473_v0 }
  0x64   : > { %517 = vst.msk [vmem:[#allocation3] sm:$0xff] %vm508_vm0, %v2473_v0  ;;  %518 = vst.msk [vmem:[#allocation3 + $0x8] sm:$0xff] %vm508_vm0, %v2473_v0 }
  0x65   : > { %519 = vst.msk [vmem:[#allocation3 + $0x10] sm:$0xff] %vm508_vm0, %v2473_v0  ;;  %520 = vst.msk [vmem:[#allocation3 + $0x18] sm:$0xff] %vm508_vm0, %v2473_v0 }
  0x66   : > { %521 = vst.msk [vmem:[#allocation3 + $0x20] sm:$0xff] %vm508_vm0, %v2473_v0  ;;  %522 = vst.msk [vmem:[#allocation3 + $0x28] sm:$0xff] %vm508_vm0, %v2473_v0 }
  0x67   : > { %523 = vst.msk [vmem:[#allocation3 + $0x30] sm:$0xff] %vm508_vm0, %v2473_v0  ;;  %524 = vst.msk [vmem:[#allocation3 + $0x38] sm:$0xff] %vm508_vm0, %v2473_v0 }
  0x68 PF: > { %v540_v1 = vld [vmem:[%s2706_s13 + $0x78] sm:$0xff]  ;;  %v539_v2 = vld [vmem:[%s2706_s13 + $0x70] sm:$0xff]  ;;  %v538_v3 = vld [vmem:[%s2706_s13 + $0x68] sm:$0xff]  ;;  %vm670_vm1 = vcmask 130048   ;;  %p1760_p1 = scmp.ne.s32.totalorder %s2450_s23, 1 }
  0x69   : > { %1881 = vmatprep.subr.mxu0 %v540_v1  ;;  %1925 = vmatprep.subr.mxu1 %v540_v1  ;;  %v537_v4 = vld [vmem:[%s2706_s13 + $0x60] sm:$0xff]  ;;  %v536_v5 = vld [vmem:[%s2706_s13 + $0x58] sm:$0xff]  ;;  %v535_v6 = vld [vmem:[%s2706_s13 + $0x50] sm:$0xff]  ;;  %s3101_s30 = sld [smem:[#allocation24_spill]] (!%p1760_p1) }
  0x6a   : > { %1882 = vmatpush3.msra.mxu0 %v540_v1  ;;  %1926 = vmatpush3.msra.mxu1 %v540_v1  ;;  %v534_v7 = vld [vmem:[%s2706_s13 + $0x48] sm:$0xff]  ;;  %v533_v8 = vld [vmem:[%s2706_s13 + $0x40] sm:$0xff]  ;;  %v532_v9 = vld [vmem:[%s2706_s13 + $0x38] sm:$0xff]  ;;  %s3102_s7 = sld [smem:[#allocation25_spill]] (!%p1760_p1) }
  0x6b   : > { %1883 = vmatprep.subr.mxu0 %v539_v2  ;;  %1927 = vmatprep.subr.mxu1 %v539_v2  ;;  %v531_v10 = vld [vmem:[%s2706_s13 + $0x30] sm:$0xff]  ;;  %v530_v11 = vld [vmem:[%s2706_s13 + $0x28] sm:$0xff]  ;;  %v529_v12 = vld [vmem:[%s2706_s13 + $0x20] sm:$0xff]  ;;  %s3103_s25 = sld [smem:[#allocation26_spill]] (!%p1760_p1) }
  0x6c   : > { %1884 = vmatpush3.msra.mxu0 %v539_v2  ;;  %1928 = vmatpush3.msra.mxu1 %v539_v2  ;;  %v528_v13 = vld [vmem:[%s2706_s13 + $0x18] sm:$0xff]  ;;  %v527_v14 = vld [vmem:[%s2706_s13 + $0x10] sm:$0xff]  ;;  %v526_v15 = vld [vmem:[%s2706_s13 + $0x8] sm:$0xff] }
  0x6d   : > { %1885 = vmatprep.subr.mxu0 %v538_v3  ;;  %1929 = vmatprep.subr.mxu1 %v538_v3  ;;  %v525_v16 = vld [vmem:[%s2706_s13] sm:$0xff]  ;;  %v550_v19 = vld [vmem:[%s2686_s28 + $0x8] sm:$0xff]  ;;  %v551_v21 = vld [vmem:[%s2686_s28 + $0x10] sm:$0xff] }
  0x6e   : > { %1886 = vmatpush3.msra.mxu0 %v538_v3  ;;  %1930 = vmatpush3.msra.mxu1 %v538_v3  ;;  %v549_v17 = vld [vmem:[%s2686_s28] sm:$0xff]  ;;  %v688_v20 = vld [vmem:[%s2692_s22 + $0x8] sm:$0xff]  ;;  %v689_v22 = vld [vmem:[%s2692_s22 + $0x10] sm:$0xff] }
  0x6f   : > { %1887 = vmatprep.subr.mxu0 %v537_v4  ;;  %1931 = vmatprep.subr.mxu1 %v537_v4  ;;  %v687_v18 = vld [vmem:[%s2692_s22] sm:$0xff]  ;;  %v552_v23 = vld [vmem:[%s2686_s28 + $0x18] sm:$0xff]  ;;  %v554_v27 = vld [vmem:[%s2686_s28 + $0x28] sm:$0xff] }
  0x70   : > { %1888 = vmatpush3.msra.mxu0 %v537_v4  ;;  %1932 = vmatpush3.msra.mxu1 %v537_v4  ;;  %v690_v24 = vld [vmem:[%s2692_s22 + $0x18] sm:$0xff]  ;;  %v553_v25 = vld [vmem:[%s2686_s28 + $0x20] sm:$0xff]  ;;  %v692_v28 = vld [vmem:[%s2692_s22 + $0x28] sm:$0xff] }
  0x71   : > { %1889 = vmatprep.subr.mxu0 %v536_v5  ;;  %1933 = vmatprep.subr.mxu1 %v536_v5  ;;  %v691_v26 = vld [vmem:[%s2692_s22 + $0x20] sm:$0xff]  ;;  %v555_v29 = vld [vmem:[%s2686_s28 + $0x30] sm:$0xff]  ;;  %v556_v31 = vld [vmem:[%s2686_s28 + $0x38] sm:$0xff]  ;;  %s3104_s12 = smov (!%p1760_p1), %s3103_s25  ;;  %s3105_s28 = sld [smem:[#allocation27_spill]] (!%p1760_p1) }
  0x72   : > { %1890 = vmatpush3.msra.mxu0 %v536_v5  ;;  %1934 = vmatpush3.msra.mxu1 %v536_v5  ;;  %v693_v30 = vld [vmem:[%s2692_s22 + $0x30] sm:$0xff]  ;;  %v694_v32 = vld [vmem:[%s2692_s22 + $0x38] sm:$0xff]  ;;  %v542_v33 = vld [vmem:[#allocation2 + $0x8] sm:$0xff] }
  0x73   : > { %1891 = vmatprep.subr.mxu0 %v535_v6  ;;  %1935 = vmatprep.subr.mxu1 %v535_v6  ;;  %v680_v34 = vld [vmem:[#allocation3 + $0x8] sm:$0xff]  ;;  %v541_v37 = vld [vmem:[#allocation2] sm:$0xff]  ;;  %v544_v43 = vld [vmem:[#allocation2 + $0x18] sm:$0xff] }
  0x74   : > { %1892 = vmatpush3.msra.mxu0 %v535_v6  ;;  %1936 = vmatpush3.msra.mxu1 %v535_v6  ;;  %v679_v38 = vld [vmem:[#allocation3] sm:$0xff]  ;;  %v682_v44 = vld [vmem:[#allocation3 + $0x18] sm:$0xff]  ;;  %v543_v49 = vld [vmem:[#allocation2 + $0x10] sm:$0xff] }
  0x75   : > { %1893 = vmatprep.subr.mxu0 %v534_v7  ;;  %1937 = vmatprep.subr.mxu1 %v534_v7  ;;  %v681_v50 = vld [vmem:[#allocation3 + $0x10] sm:$0xff]  ;;  %v546_v55 = vld [vmem:[#allocation2 + $0x28] sm:$0xff]  ;;  %v545_v61 = vld [vmem:[#allocation2 + $0x20] sm:$0xff] }
  0x76   : > { %1894 = vmatpush3.msra.mxu0 %v534_v7  ;;  %1938 = vmatpush3.msra.mxu1 %v534_v7  ;;  %v684_v56 = vld [vmem:[#allocation3 + $0x28] sm:$0xff]  ;;  %v683_v62 = vld [vmem:[#allocation3 + $0x20] sm:$0xff]  ;;  %v548_v3 = vld [vmem:[#allocation2 + $0x38] sm:$0xff] }
  0x77   : > { %1895 = vmatprep.subr.mxu0 %v533_v8  ;;  %1939 = vmatprep.subr.mxu1 %v533_v8  ;;  %v686_v4 = vld [vmem:[#allocation3 + $0x38] sm:$0xff] }
  0x78   : > { %1896 = vmatpush3.msra.mxu0 %v533_v8  ;;  %1940 = vmatpush3.msra.mxu1 %v533_v8 }
  0x79   : > { %1897 = vmatprep.subr.mxu0 %v532_v9  ;;  %1941 = vmatprep.subr.mxu1 %v532_v9 }
  0x7a   : > { %1898 = vmatpush3.msra.mxu0 %v532_v9  ;;  %1942 = vmatpush3.msra.mxu1 %v532_v9  ;;  %v547_v9 = vld [vmem:[#allocation2 + $0x30] sm:$0xff] }
  0x7b   : > { %1899 = vmatprep.subr.mxu0 %v531_v10  ;;  %1943 = vmatprep.subr.mxu1 %v531_v10 }
  0x7c   : > { %1900 = vmatpush3.msra.mxu0 %v531_v10  ;;  %1944 = vmatpush3.msra.mxu1 %v531_v10  ;;  %v685_v10 = vld [vmem:[#allocation3 + $0x30] sm:$0xff] }
  0x7d   : > { %1901 = vmatprep.subr.mxu0 %v530_v11  ;;  %1945 = vmatprep.subr.mxu1 %v530_v11 }
  0x7e   : > { %1902 = vmatpush3.msra.mxu0 %v530_v11  ;;  %1946 = vmatpush3.msra.mxu1 %v530_v11 }
  0x7f   : > { %1903 = vmatprep.subr.mxu0 %v529_v12  ;;  %1947 = vmatprep.subr.mxu1 %v529_v12 }
  0x80   : > { %1904 = vmatpush3.msra.mxu0 %v529_v12  ;;  %1948 = vmatpush3.msra.mxu1 %v529_v12 }
  0x81   : > { %1905 = vmatprep.subr.mxu0 %v528_v13  ;;  %1949 = vmatprep.subr.mxu1 %v528_v13 }
  0x82   : > { %1906 = vmatpush3.msra.mxu0 %v528_v13  ;;  %1950 = vmatpush3.msra.mxu1 %v528_v13 }
  0x83   : > { %1907 = vmatprep.subr.mxu0 %v527_v14  ;;  %1951 = vmatprep.subr.mxu1 %v527_v14 }
  0x84   : > { %1908 = vmatpush3.msra.mxu0 %v527_v14  ;;  %1952 = vmatpush3.msra.mxu1 %v527_v14 }
  0x85   : > { %1909 = vmatprep.subr.mxu0 %v526_v15  ;;  %1953 = vmatprep.subr.mxu1 %v526_v15 }
  0x86   : > { %1910 = vmatpush3.msra.mxu0 %v526_v15  ;;  %1954 = vmatpush3.msra.mxu1 %v526_v15 }
  0x87   : > { %1911 = vmatprep.subr.mxu0 %v525_v16  ;;  %1955 = vmatprep.subr.mxu1 %v525_v16 }
  0x88   : > { %1912 = vmatpush3.msra.mxu0 %v525_v16  ;;  %1913 = vmatprep.mubr.f32.mxu0 %v549_v17 }
  0x89   : > { %1956 = vmatpush3.msra.mxu1 %v525_v16  ;;  %1957 = vmatprep.mubr.f32.mxu1 %v687_v18 }
  0x8a   : > { %1914 = vmatmul.mubr.f32.vlgmr.msra.gmra.mxu0 %v550_v19  ;;  %1958 = vmatmul.mubr.f32.vlgmr.msra.gmra.mxu1 %v688_v20 }
  0x8b   : > { %1916 = vmatprep.mubr.f32.mxu0 %v551_v21  ;;  %1960 = vmatprep.mubr.f32.mxu1 %v689_v22 }
  0x8e   : > { %1917 = vmatmul.mubr.f32.gmra.mxu0 %v552_v23  ;;  %1961 = vmatmul.mubr.f32.gmra.mxu1 %v690_v24 }
  0x8f   : > { %1919 = vmatprep.mubr.f32.mxu0 %v553_v25  ;;  %1963 = vmatprep.mubr.f32.mxu1 %v691_v26 }
  0x92   : > { %1920 = vmatmul.mubr.f32.gmra.mxu0 %v554_v27  ;;  %1964 = vmatmul.mubr.f32.gmra.mxu1 %v692_v28 }
  0x93   : > { %1922 = vmatprep.mubr.f32.mxu0 %v555_v29  ;;  %1966 = vmatprep.mubr.f32.mxu1 %v693_v30 }
  0x96   : > { %1923 = vmatmul.mubr.f32.gmra.mxu0 %v556_v31  ;;  %1967 = vmatmul.mubr.f32.gmra.mxu1 %v694_v32 }
 0x14a   : > { %v1915_v35 = vpop.f32.mrf.mxu0  ;;  %v1959_v36 = vpop.f32.mrf.mxu1 }
 0x14b   : > { %v663_v39 = vadd.f32 %v1915_v35, %v542_v33  ;;  %v801_v40 = vadd.f32 %v1959_v36, %v680_v34 }
 0x14c   : > { %v623_v41 = vpop.f32.mrf.mxu0  ;;  %v761_v42 = vpop.f32.mrf.mxu1 }
 0x14d   : > { %672 = vst.msk [vmem:[#allocation2 + $0x8] sm:$0xff] %vm670_vm1, %v663_v39  ;;  %809 = vst.msk [vmem:[#allocation3 + $0x8] sm:$0xff] %vm670_vm1, %v801_v40  ;;  %v662_v45 = vadd.f32 %v623_v41, %v541_v37  ;;  %v800_v46 = vadd.f32 %v761_v42, %v679_v38 }
 0x14e   : > { %v1918_v47 = vpop.f32.mrf.mxu0  ;;  %v1962_v48 = vpop.f32.mrf.mxu1 }
 0x14f   : > { %671 = vst.msk [vmem:[#allocation2] sm:$0xff] %vm670_vm1, %v662_v45  ;;  %808 = vst.msk [vmem:[#allocation3] sm:$0xff] %vm670_vm1, %v800_v46  ;;  %v665_v51 = vadd.f32 %v1918_v47, %v544_v43  ;;  %v803_v52 = vadd.f32 %v1962_v48, %v682_v44 }
 0x150   : > { %v633_v53 = vpop.f32.mrf.mxu0  ;;  %v771_v54 = vpop.f32.mrf.mxu1 }
 0x151   : > { %674 = vst.msk [vmem:[#allocation2 + $0x18] sm:$0xff] %vm670_vm1, %v665_v51  ;;  %811 = vst.msk [vmem:[#allocation3 + $0x18] sm:$0xff] %vm670_vm1, %v803_v52  ;;  %v664_v57 = vadd.f32 %v633_v53, %v543_v49  ;;  %v802_v58 = vadd.f32 %v771_v54, %v681_v50 }
 0x152   : > { %v1921_v59 = vpop.f32.mrf.mxu0  ;;  %v1965_v60 = vpop.f32.mrf.mxu1 }
 0x153   : > { %673 = vst.msk [vmem:[#allocation2 + $0x10] sm:$0xff] %vm670_vm1, %v664_v57  ;;  %810 = vst.msk [vmem:[#allocation3 + $0x10] sm:$0xff] %vm670_vm1, %v802_v58  ;;  %v667_v63 = vadd.f32 %v1921_v59, %v546_v55  ;;  %v805_v0 = vadd.f32 %v1965_v60, %v684_v56 }
 0x154   : > { %v643_v1 = vpop.f32.mrf.mxu0  ;;  %v781_v2 = vpop.f32.mrf.mxu1 }
 0x155   : > { %676 = vst.msk [vmem:[#allocation2 + $0x28] sm:$0xff] %vm670_vm1, %v667_v63  ;;  %813 = vst.msk [vmem:[#allocation3 + $0x28] sm:$0xff] %vm670_vm1, %v805_v0  ;;  %v666_v5 = vadd.f32 %v643_v1, %v545_v61  ;;  %v804_v6 = vadd.f32 %v781_v2, %v683_v62 }
 0x156   : > { %v1924_v7 = vpop.f32.mrf.mxu0  ;;  %v1968_v8 = vpop.f32.mrf.mxu1 }
 0x157   : > { %675 = vst.msk [vmem:[#allocation2 + $0x20] sm:$0xff] %vm670_vm1, %v666_v5  ;;  %812 = vst.msk [vmem:[#allocation3 + $0x20] sm:$0xff] %vm670_vm1, %v804_v6  ;;  %v669_v11 = vadd.f32 %v1924_v7, %v548_v3  ;;  %v807_v12 = vadd.f32 %v1968_v8, %v686_v4  ;;  %819 = sbr.rel (%p1760_p1) target bundleno = 1177 (0x499), region = 76 }
 0x158   : > { %v653_v13 = vpop.f32.mrf.mxu0  ;;  %v791_v14 = vpop.f32.mrf.mxu1 }
 0x159   : > { %678 = vst.msk [vmem:[#allocation2 + $0x38] sm:$0xff] %vm670_vm1, %v669_v11  ;;  %815 = vst.msk [vmem:[#allocation3 + $0x38] sm:$0xff] %vm670_vm1, %v807_v12  ;;  %v668_v15 = vadd.f32 %v653_v13, %v547_v9  ;;  %v806_v16 = vadd.f32 %v791_v14, %v685_v10 }
 0x15b   : > { %677 = vst.msk [vmem:[#allocation2 + $0x30] sm:$0xff] %vm670_vm1, %v668_v15  ;;  %814 = vst.msk [vmem:[#allocation3 + $0x30] sm:$0xff] %vm670_vm1, %v806_v16 }
 0x15c   : > { %v829_v17 = vld [vmem:[%s3057_s3 + $0x8] sm:$0xff]  ;;  %v828_v18 = vld [vmem:[%s3057_s3] sm:$0xff]  ;;  %v822_v24 = vld [vmem:[#allocation2 + $0x10] sm:$0xff]  ;;  %vm1519_vm2 = vcmask 64512  }
 0x15d   : > { %v975_v19 = vld [vmem:[%s3059_s5 + $0x8] sm:$0xff]  ;;  %1969 = vmatprep.subr.mxu0 %v829_v17  ;;  %v820_v20 = vld [vmem:[#allocation2] sm:$0xff]  ;;  %v968_v26 = vld [vmem:[#allocation3 + $0x10] sm:$0xff] }
 0x15e   : > { %1985 = vmatprep.subr.mxu1 %v975_v19  ;;  %v974_v21 = vld [vmem:[%s3059_s5] sm:$0xff]  ;;  %1970 = vmatpush3.msra.mxu0 %v829_v17  ;;  %v821_v22 = vld [vmem:[#allocation2 + $0x8] sm:$0xff]  ;;  %v823_v27 = vld [vmem:[#allocation2 + $0x18] sm:$0xff] }
 0x15f   : > { %1973 = vmatprep.mubr.msk.f32.mxu0 %vm670_vm1, %v820_v20  ;;  %1971 = vmatprep.subr.mxu0 %v828_v18  ;;  %v966_v23 = vld [vmem:[#allocation3] sm:$0xff]  ;;  %v967_v25 = vld [vmem:[#allocation3 + $0x8] sm:$0xff]  ;;  %v969_v29 = vld [vmem:[#allocation3 + $0x18] sm:$0xff] }
 0x160   : > { %1986 = vmatpush3.msra.mxu1 %v975_v19  ;;  %1972 = vmatpush3.msra.mxu0 %v828_v18  ;;  %v824_v28 = vld [vmem:[#allocation2 + $0x20] sm:$0xff]  ;;  %v825_v31 = vld [vmem:[#allocation2 + $0x28] sm:$0xff]  ;;  %v827_v35 = vld [vmem:[#allocation2 + $0x38] sm:$0xff] }
 0x161   : > { %1987 = vmatprep.subr.mxu1 %v974_v21  ;;  %1974 = vmatmul.mubr.msk.f32.vlgmr.msra.gmra.mxu0 %vm670_vm1, %v821_v22  ;;  %v970_v30 = vld [vmem:[#allocation3 + $0x20] sm:$0xff]  ;;  %v971_v33 = vld [vmem:[#allocation3 + $0x28] sm:$0xff]  ;;  %v973_v36 = vld [vmem:[#allocation3 + $0x38] sm:$0xff] }
 0x162   : > { %1988 = vmatpush3.msra.mxu1 %v974_v21  ;;  %1989 = vmatprep.mubr.msk.f32.mxu1 %vm670_vm1, %v966_v23  ;;  %v826_v32 = vld [vmem:[#allocation2 + $0x30] sm:$0xff]  ;;  %v1761_v37 = vld [vmem:[%s3058_s4] ss:$0 sm:$0xff]  ;;  %v1270_v23 = vld [vmem:[%s3103_s25 + $0x78] sm:$0xff] }
 0x163   : > { %1976 = vmatprep.mubr.msk.f32.mxu0 %vm670_vm1, %v822_v24  ;;  %1990 = vmatmul.mubr.msk.f32.vlgmr.msra.gmra.mxu1 %vm670_vm1, %v967_v25  ;;  %v972_v34 = vld [vmem:[#allocation3 + $0x30] sm:$0xff]  ;;  %v1770_v39 = vld [vmem:[%s3101_s30] ss:$0 sm:$0xff] }
 0x164   : > { %1992 = vmatprep.mubr.msk.f32.mxu1 %vm670_vm1, %v968_v26  ;;  %v2818_v40 = vld [vmem:[%s3102_s7] ss:$0 sm:$0xff]  ;;  %2001 = vmatprep.subr.mxu0 %v1270_v23  ;;  %v1269_v24 = vld [vmem:[%s3104_s12 + $0x70] sm:$0xff]  ;;  %v1268_v26 = vld [vmem:[%s3104_s12 + $0x68] sm:$0xff] }
 0x165   : > { %1977 = vmatmul.mubr.msk.f32.gmra.mxu0 %vm670_vm1, %v823_v27  ;;  %2045 = vmatprep.subr.mxu1 %v1270_v23  ;;  %v1267_v27 = vld [vmem:[%s3104_s12 + $0x60] sm:$0xff] }
 0x166   : > { %1979 = vmatprep.mubr.msk.f32.mxu0 %vm670_vm1, %v824_v28  ;;  %2002 = vmatpush3.msra.mxu0 %v1270_v23  ;;  %v1266_v28 = vld [vmem:[%s3104_s12 + $0x58] sm:$0xff] }
 0x167   : > { %1993 = vmatmul.mubr.msk.f32.gmra.mxu1 %vm670_vm1, %v969_v29  ;;  %2003 = vmatprep.subr.mxu0 %v1269_v24  ;;  %v1265_v29 = vld [vmem:[%s3104_s12 + $0x50] sm:$0xff] }
 0x168   : > { %1995 = vmatprep.mubr.msk.f32.mxu1 %vm670_vm1, %v970_v30  ;;  %2061 = vmatpush3.msra.mxu1 %v1270_v23  ;;  %v1264_v30 = vld [vmem:[%s3104_s12 + $0x48] sm:$0xff] }
 0x169   : > { %1980 = vmatmul.mubr.msk.f32.gmra.mxu0 %vm670_vm1, %v825_v31  ;;  %2046 = vmatprep.subr.mxu1 %v1269_v24  ;;  %v1263_v31 = vld [vmem:[%s3104_s12 + $0x40] sm:$0xff] }
 0x16a   : > { %1982 = vmatprep.mubr.msk.f32.mxu0 %vm670_vm1, %v826_v32  ;;  %2004 = vmatpush3.msra.mxu0 %v1269_v24  ;;  %v1262_v32 = vld [vmem:[%s3104_s12 + $0x38] sm:$0xff] }
 0x16b   : > { %1996 = vmatmul.mubr.msk.f32.gmra.mxu1 %vm670_vm1, %v971_v33  ;;  %2005 = vmatprep.subr.mxu0 %v1268_v26  ;;  %v1261_v33 = vld [vmem:[%s3104_s12 + $0x30] sm:$0xff] }
 0x16c   : > { %1998 = vmatprep.mubr.msk.f32.mxu1 %vm670_vm1, %v972_v34  ;;  %2062 = vmatpush3.msra.mxu1 %v1269_v24  ;;  %v1260_v34 = vld [vmem:[%s3104_s12 + $0x28] sm:$0xff] }
 0x16d   : > { %1983 = vmatmul.mubr.msk.f32.gmra.mxu0 %vm670_vm1, %v827_v35  ;;  %2047 = vmatprep.subr.mxu1 %v1268_v26  ;;  %v1259_v35 = vld [vmem:[%s3104_s12 + $0x20] sm:$0xff] }
 0x16e   : > { %2006 = vmatpush3.msra.mxu0 %v1268_v26  ;;  %2063 = vmatpush3.msra.mxu1 %v1268_v26 }
 0x16f   : > { %1999 = vmatmul.mubr.msk.f32.gmra.mxu1 %vm670_vm1, %v973_v36  ;;  %2007 = vmatprep.subr.mxu0 %v1267_v27  ;;  %v1258_v36 = vld [vmem:[%s3104_s12 + $0x18] sm:$0xff] }
 0x170   : > { %2008 = vmatpush3.msra.mxu0 %v1267_v27  ;;  %2048 = vmatprep.subr.mxu1 %v1267_v27 }
 0x171   : > { %2009 = vmatprep.subr.mxu0 %v1266_v28  ;;  %2064 = vmatpush3.msra.mxu1 %v1267_v27 }
 0x172   : > { %2010 = vmatpush3.msra.mxu0 %v1266_v28  ;;  %2049 = vmatprep.subr.mxu1 %v1266_v28 }
 0x173   : > { %2011 = vmatprep.subr.mxu0 %v1265_v29  ;;  %2065 = vmatpush3.msra.mxu1 %v1266_v28 }
 0x174   : > { %2012 = vmatpush3.msra.mxu0 %v1265_v29  ;;  %2050 = vmatprep.subr.mxu1 %v1265_v29 }
 0x175   : > { %2066 = vmatpush3.msra.mxu1 %v1265_v29  ;;  %2013 = vmatprep.subr.mxu0 %v1264_v30 }
 0x176   : > { %2051 = vmatprep.subr.mxu1 %v1264_v30  ;;  %2014 = vmatpush3.msra.mxu0 %v1264_v30 }
 0x177   : > { %2067 = vmatpush3.msra.mxu1 %v1264_v30  ;;  %2015 = vmatprep.subr.mxu0 %v1263_v31 }
 0x178   : > { %2052 = vmatprep.subr.mxu1 %v1263_v31  ;;  %2016 = vmatpush3.msra.mxu0 %v1263_v31 }
 0x179   : > { %2068 = vmatpush3.msra.mxu1 %v1263_v31  ;;  %2017 = vmatprep.subr.mxu0 %v1262_v32 }
 0x17a   : > { %2053 = vmatprep.subr.mxu1 %v1262_v32  ;;  %2018 = vmatpush3.msra.mxu0 %v1262_v32 }
 0x17b   : > { %2069 = vmatpush3.msra.mxu1 %v1262_v32  ;;  %2019 = vmatprep.subr.mxu0 %v1261_v33 }
 0x17c   : > { %2054 = vmatprep.subr.mxu1 %v1261_v33  ;;  %2020 = vmatpush3.msra.mxu0 %v1261_v33 }
 0x17d   : > { %2070 = vmatpush3.msra.mxu1 %v1261_v33  ;;  %2021 = vmatprep.subr.mxu0 %v1260_v34 }
 0x17e   : > { %2055 = vmatprep.subr.mxu1 %v1260_v34  ;;  %2022 = vmatpush3.msra.mxu0 %v1260_v34 }
 0x17f   : > { %2071 = vmatpush3.msra.mxu1 %v1260_v34  ;;  %2023 = vmatprep.subr.mxu0 %v1259_v35 }
 0x180   : > { %2056 = vmatprep.subr.mxu1 %v1259_v35  ;;  %2024 = vmatpush3.msra.mxu0 %v1259_v35 }
 0x181   : > { %2072 = vmatpush3.msra.mxu1 %v1259_v35  ;;  %2025 = vmatprep.subr.mxu0 %v1258_v36 }
 0x182   : > { %2057 = vmatprep.subr.mxu1 %v1258_v36  ;;  %2026 = vmatpush3.msra.mxu0 %v1258_v36 }
 0x183   : > { %2073 = vmatpush3.msra.mxu1 %v1258_v36 }
 0x221   : > { %v1975_v38 = vpop.f32.mrf.mxu0 }
 0x222   : > { %v2820_v41 = vadd.f32 %v1975_v38, %v1761_v37  ;;  %v1256_v38 = vld [vmem:[%s3104_s12 + $0x8] sm:$0xff] }
 0x223   : > { %v927_v42 = vpop.f32.mrf.mxu0  ;;  %v1991_v43 = vpop.f32.mrf.mxu1 }
 0x224   : > { %v2822_v44 = vadd.f32 %v1991_v43, %v1770_v39  ;;  %v1120_v45 = vmul.f32 %v2818_v40, %v2820_v41  ;;  %v2830_v52 = vadd.f32 %v1761_v37, %v927_v42 }
 0x225   : > { %v1978_v46 = vpop.f32.mrf.mxu0  ;;  %v1073_v47 = vpop.f32.mrf.mxu1 }
 0x226   : > { %v2826_v48 = vadd.f32 %v1770_v39, %v1073_v47  ;;  %1129 = vadd.xlane.f32.xlu0 %v1120_v45  ;;  %v1144_v49 = vmul.f32 %v2818_v40, %v2822_v44  ;;  %v1119_v61 = vmul.f32 %v2818_v40, %v2830_v52  ;;  %v2864_v14 = vadd.f32 %v1978_v46, %v1761_v37 }
 0x227   : > { %v937_v50 = vpop.f32.mrf.mxu0  ;;  %v1994_v51 = vpop.f32.mrf.mxu1 }
 0x228   : > { %v1143_v53 = vmul.f32 %v2818_v40, %v2826_v48  ;;  %v2836_v58 = vadd.f32 %v1761_v37, %v937_v50  ;;  %v2872_v18 = vadd.f32 %v1994_v51, %v1770_v39  ;;  %v1122_v19 = vmul.f32 %v2818_v40, %v2864_v14 }
 0x229   : > { %v1981_v54 = vpop.f32.mrf.mxu0  ;;  %v1083_v55 = vpop.f32.mrf.mxu1 }
 0x22a   : > { %v2834_v56 = vadd.f32 %v1981_v54, %v1761_v37  ;;  %1151 = vadd.xlane.f32.xlu1 %v1143_v53  ;;  %1153 = vadd.xlane.f32.xlu0 %v1144_v49  ;;  %v2848_v3 = vadd.f32 %v1770_v39, %v1083_v55  ;;  %v1121_v4 = vmul.f32 %v2818_v40, %v2836_v58 }
 0x22b   : > { %v1997_v57 = vpop.f32.mrf.mxu1  ;;  %v947_v62 = vpop.f32.mrf.mxu0  ;;  %v1146_v22 = vmul.f32 %v2818_v40, %v2872_v18 }
 0x22c   : > { %v2838_v59 = vadd.f32 %v1997_v57, %v1770_v39  ;;  %v1124_v60 = vmul.f32 %v2818_v40, %v2834_v56  ;;  %v2856_v9 = vadd.f32 %v1761_v37, %v947_v62  ;;  %v1145_v10 = vmul.f32 %v2818_v40, %v2848_v3 }
 0x22d   : > { %v1093_v63 = vpop.f32.mrf.mxu1  ;;  %v1984_v2 = vpop.f32.mrf.mxu0 }
 0x22e   : > { %1137 = vadd.xlane.f32.xlu1 %v1124_v60  ;;  %1127 = vadd.xlane.f32.xlu0 %v1119_v61  ;;  %v2844_v0 = vadd.f32 %v1770_v39, %v1093_v63  ;;  %v1148_v1 = vmul.f32 %v2818_v40, %v2838_v59  ;;  %v2852_v5 = vadd.f32 %v1984_v2, %v1761_v37 }
 0x22f   : > { %v957_v7 = vpop.f32.mrf.mxu0  ;;  %v2000_v8 = vpop.f32.mrf.mxu1  ;;  %v1123_v15 = vmul.f32 %v2818_v40, %v2856_v9 }
 0x230   : > { %v1147_v6 = vmul.f32 %v2818_v40, %v2844_v0  ;;  %v2860_v11 = vadd.f32 %v1761_v37, %v957_v7  ;;  %v1126_v12 = vmul.f32 %v2818_v40, %v2852_v5  ;;  %v2878_v21 = vadd.f32 %v2000_v8, %v1770_v39  ;;  %v1257_v37 = vld [vmem:[%s3104_s12 + $0x10] sm:$0xff] }
 0x231   : > { %v1103_v13 = vpop.f32.mrf.mxu1  ;;  %2027 = vmatprep.subr.mxu0 %v1257_v37  ;;  %2058 = vmatprep.subr.mxu1 %v1257_v37 }
 0x232   : > { %1161 = vadd.xlane.f32.xlu1 %v1148_v1  ;;  %1131 = vadd.xlane.f32.xlu0 %v1121_v4  ;;  %v2868_v16 = vadd.f32 %v1770_v39, %v1103_v13  ;;  %v1125_v17 = vmul.f32 %v2818_v40, %v2860_v11  ;;  %v1150_v25 = vmul.f32 %v2818_v40, %v2878_v21  ;;  %v1255_v39 = vld [vmem:[%s3104_s12] sm:$0xff] }
 0x233   : > { %2028 = vmatpush3.msra.mxu0 %v1257_v37  ;;  %2074 = vmatpush3.msra.mxu1 %v1257_v37 }
 0x234   : > { %v1149_v20 = vmul.f32 %v2818_v40, %v2868_v16  ;;  %2029 = vmatprep.subr.mxu0 %v1256_v38  ;;  %2059 = vmatprep.subr.mxu1 %v1256_v38 }
 0x235   : > { %2030 = vmatpush3.msra.mxu0 %v1256_v38  ;;  %2075 = vmatpush3.msra.mxu1 %v1256_v38 }
 0x236   : > { %1159 = vadd.xlane.f32.xlu1 %v1147_v6  ;;  %1155 = vadd.xlane.f32.xlu0 %v1145_v10 }
 0x237   : > { %2031 = vmatprep.subr.mxu0 %v1255_v39  ;;  %2060 = vmatprep.subr.mxu1 %v1255_v39 }
 0x238   : > { %2032 = vmatpush3.msra.mxu0 %v1255_v39  ;;  %2076 = vmatpush3.msra.mxu1 %v1255_v39 }
 0x23a   : > { %1141 = vadd.xlane.f32.xlu1 %v1126_v12  ;;  %1135 = vadd.xlane.f32.xlu0 %v1123_v15 }
 0x23e   : > { %1139 = vadd.xlane.f32.xlu1 %v1125_v17  ;;  %1133 = vadd.xlane.f32.xlu0 %v1122_v19 }
 0x242   : > { %1163 = vadd.xlane.f32.xlu1 %v1149_v20  ;;  %1157 = vadd.xlane.f32.xlu0 %v1146_v22 }
 0x246   : > { %1165 = vadd.xlane.f32.xlu1 %v1150_v25 }
 0x2af   : > { %v1130_v40 = vpop.xlane.xlu0 %1129 }
 0x2b3   : > { %v1152_v42 = vpop.xlane.xlu1 %1151  ;;  %v1154_v43 = vpop.xlane.xlu0 %1153 }
 0x2b4   : > { %v1168_v45 = vsub.f32 %v1154_v43, %v1130_v40 }
 0x2b6   : > { %v1177_v46 = vmul.f32 1.442695, %v1168_v45 }
 0x2b7   : > { %v1138_v47 = vpop.xlane.xlu1 %1137  ;;  %v1128_v49 = vpop.xlane.xlu0 %1127 }
 0x2b8   : > { %2190 = vpow2.f32 %v1177_v46  ;;  %v1167_v50 = vsub.f32 %v1152_v42, %v1128_v49 }
 0x2ba   : > { %v1175_v51 = vmul.f32 1.442695, %v1167_v50 }
 0x2bb   : > { %v1162_v53 = vpop.xlane.xlu1 %1161  ;;  %v1132_v54 = vpop.xlane.xlu0 %1131 }
 0x2bc   : > { %2192 = vpow2.f32 %v1175_v51  ;;  %v1172_v55 = vsub.f32 %v1162_v53, %v1138_v47 }
 0x2be   : > { %v1185_v57 = vmul.f32 1.442695, %v1172_v55 }
 0x2bf   : > { %v1160_v60 = vpop.xlane.xlu1 %1159  ;;  %v1156_v61 = vpop.xlane.xlu0 %1155 }
 0x2c0   : > { %2194 = vpow2.f32 %v1185_v57  ;;  %v1169_v62 = vsub.f32 %v1156_v61, %v1132_v54 }
 0x2c2   : > { %v1179_v63 = vmul.f32 1.442695, %v1169_v62 }
 0x2c3   : > { %v1142_v1 = vpop.xlane.xlu1 %1141  ;;  %v1136_v2 = vpop.xlane.xlu0 %1135 }
 0x2c4   : > { %2196 = vpow2.f32 %v1179_v63  ;;  %v1171_v4 = vsub.f32 %v1160_v60, %v1136_v2 }
 0x2c5   : > { %v2191_v6 = vpop.eup %2190 }
 0x2c6   : > { %v1192_v7 = vadd.f32 1.0, %v2191_v6  ;;  %v1183_v8 = vmul.f32 1.442695, %v1171_v4 }
 0x2c7   : > { %v1140_v10 = vpop.xlane.xlu1 %1139  ;;  %v1134_v12 = vpop.xlane.xlu0 %1133 }
 0x2c8   : > { %2198 = vrcp.f32 %v1192_v7 }
 0x2c9   : > { %v2193_v13 = vpop.eup %2192  ;;  %2200 = vpow2.f32 %v1183_v8 }
 0x2ca   : > { %v1191_v15 = vadd.f32 1.0, %v2193_v13 }
 0x2cb   : > { %v1164_v17 = vpop.xlane.xlu1 %1163  ;;  %v1158_v19 = vpop.xlane.xlu0 %1157 }
 0x2cc   : > { %2202 = vrcp.f32 %v1191_v15  ;;  %v1173_v20 = vsub.f32 %v1164_v17, %v1140_v10  ;;  %v1170_v22 = vsub.f32 %v1158_v19, %v1134_v12 }
 0x2cd   : > { %v2195_v23 = vpop.eup %2194 }
 0x2ce   : > { %v1196_v24 = vadd.f32 1.0, %v2195_v23  ;;  %v1187_v25 = vmul.f32 1.442695, %v1173_v20  ;;  %v1181_v26 = vmul.f32 1.442695, %v1170_v22 }
 0x2cf   : > { %v1166_v27 = vpop.xlane.xlu1 %1165 }
 0x2d0   : > { %2204 = vrcp.f32 %v1196_v24  ;;  %v1174_v28 = vsub.f32 %v1166_v27, %v1142_v1 }
 0x2d1   : > { %v2197_v29 = vpop.eup %2196  ;;  %2206 = vpow2.f32 %v1187_v25 }
 0x2d2   : > { %v1193_v30 = vadd.f32 1.0, %v2197_v29  ;;  %2208 = vpow2.f32 %v1181_v26  ;;  %v1189_v31 = vmul.f32 1.442695, %v1174_v28  ;;  %v1780_v26 = vld [vmem:[%s3105_s28] ss:$0 sm:$0xff] }
 0x2d4   : > { %2210 = vrcp.f32 %v1193_v30 }
 0x2d5   : > { %v2199_v32 = vpop.eup %2198  ;;  %2212 = vpow2.f32 %v1189_v31 }
 0x2d6   : > { %v2201_v33 = vpop.eup %2200  ;;  %v1224_v34 = vsub.f32 1.0, %v2199_v32  ;;  %v1216_v36 = vmul.f32 %v2199_v32, %v2820_v41 }
 0x2d7   : > { %v1195_v35 = vadd.f32 1.0, %v2201_v33 }
 0x2d8   : > { %v1232_v37 = vmul.f32 %v1224_v34, %v2822_v44 }
 0x2d9   : > { %v2203_v38 = vpop.eup %2202  ;;  %2214 = vrcp.f32 %v1195_v35 }
 0x2da   : > { %v1240_v39 = vadd.f32 %v1232_v37, %v1216_v36  ;;  %v1223_v40 = vsub.f32 1.0, %v2203_v38  ;;  %v1215_v43 = vmul.f32 %v2203_v38, %v2830_v52 }
 0x2dc   : > { %1248 = vst [vmem:[%s2713_s16 + $0x8] sm:$0xff] %v1240_v39  ;;  %v1377_v42 = vmul.f32 %v1240_v39, %v1240_v39  ;;  %v1231_v45 = vmul.f32 %v1223_v40, %v2826_v48 }
 0x2dd   : > { %v2205_v46 = vpop.eup %2204 }
 0x2de   : > { %v2207_v47 = vpop.eup %2206  ;;  %1386 = vadd.xlane.f32.xlu1 %v1377_v42  ;;  %v1239_v49 = vadd.f32 %v1231_v45, %v1215_v43  ;;  %v1228_v50 = vsub.f32 1.0, %v2205_v46  ;;  %v1220_v54 = vmul.f32 %v2205_v46, %v2834_v56 }
 0x2df   : > { %v2209_v51 = vpop.eup %2208  ;;  %v1197_v41 = vadd.f32 1.0, %v2207_v47 }
 0x2e0   : > { %v1194_v53 = vadd.f32 1.0, %v2209_v51  ;;  %1247 = vst [vmem:[%s2713_s16] sm:$0xff] %v1239_v49  ;;  %2033 = vmatprep.mubr.f32.mxu0 %v1239_v49  ;;  %v1376_v44 = vmul.f32 %v1239_v49, %v1239_v49  ;;  %v1236_v55 = vmul.f32 %v1228_v50, %v2838_v59 }
 0x2e1   : > { %v2211_v57 = vpop.eup %2210  ;;  %2216 = vrcp.f32 %v1197_v41  ;;  %2034 = vmatmul.mubr.f32.vlgmr.msra.gmra.mxu0 %v1240_v39 }
 0x2e2   : > { %v2213_v48 = vpop.eup %2212  ;;  %2218 = vrcp.f32 %v1194_v53  ;;  %1384 = vadd.xlane.f32.xlu0 %v1376_v44  ;;  %v1225_v52 = vsub.f32 1.0, %v2211_v57  ;;  %v1244_v60 = vadd.f32 %v1236_v55, %v1220_v54  ;;  %v1217_v62 = vmul.f32 %v2211_v57, %v2836_v58 }
 0x2e3   : > { %v1198_v61 = vadd.f32 1.0, %v2213_v48 }
 0x2e4   : > { %v1233_v63 = vmul.f32 %v1225_v52, %v2848_v3  ;;  %1252 = vst [vmem:[%s2713_s16 + $0x28] sm:$0xff] %v1244_v60 }
 0x2e5   : > { %2220 = vrcp.f32 %v1198_v61 }
 0x2e6   : > { %v2215_v56 = vpop.eup %2214  ;;  %v1241_v1 = vadd.f32 %v1233_v63, %v1217_v62 }
 0x2e7   : > { %v1227_v59 = vsub.f32 1.0, %v2215_v56  ;;  %v1219_v4 = vmul.f32 %v2215_v56, %v2856_v9 }
 0x2e8   : > { %1249 = vst [vmem:[%s2713_s16 + $0x10] sm:$0xff] %v1241_v1  ;;  %2036 = vmatprep.mubr.f32.mxu0 %v1241_v1  ;;  %v1378_v2 = vmul.f32 %v1241_v1, %v1241_v1 }
 0x2e9   : > { %v1235_v6 = vmul.f32 %v1227_v59, %v2844_v0 }
 0x2ea   : > { %1388 = vadd.xlane.f32.xlu0 %v1378_v2 }
 0x2eb   : > { %v1243_v7 = vadd.f32 %v1235_v6, %v1219_v4 }
 0x2ed   : > { %1251 = vst [vmem:[%s2713_s16 + $0x20] sm:$0xff] %v1243_v7  ;;  %2039 = vmatprep.mubr.f32.mxu1 %v1243_v7  ;;  %v1380_v58 = vmul.f32 %v1243_v7, %v1243_v7 }
 0x2ee   : > { %v2217_v8 = vpop.eup %2216  ;;  %2040 = vmatmul.mubr.f32.vlgmr.msra.gmra.mxu1 %v1244_v60 }
 0x2ef   : > { %v2219_v3 = vpop.eup %2218  ;;  %1392 = vadd.xlane.f32.xlu0 %v1380_v58  ;;  %v1229_v10 = vsub.f32 1.0, %v2217_v8  ;;  %v1221_v13 = vmul.f32 %v2217_v8, %v2860_v11 }
 0x2f0   : > { %v1226_v12 = vsub.f32 1.0, %v2219_v3  ;;  %v1218_v0 = vmul.f32 %v2219_v3, %v2864_v14  ;;  %v1381_v14 = vmul.f32 %v1244_v60, %v1244_v60 }
 0x2f1   : > { %v1237_v15 = vmul.f32 %v1229_v10, %v2868_v16 }
 0x2f2   : > { %v2221_v9 = vpop.eup %2220  ;;  %v1234_v17 = vmul.f32 %v1226_v12, %v2872_v18 }
 0x2f3   : > { %v1245_v19 = vadd.f32 %v1237_v15, %v1221_v13  ;;  %v1230_v20 = vsub.f32 1.0, %v2221_v9  ;;  %v1222_v24 = vmul.f32 %v2221_v9, %v2852_v5 }
 0x2f4   : > { %v1242_v22 = vadd.f32 %v1234_v17, %v1218_v0 }
 0x2f5   : > { %1253 = vst [vmem:[%s2713_s16 + $0x30] sm:$0xff] %v1245_v19  ;;  %2042 = vmatprep.mubr.f32.mxu1 %v1245_v19  ;;  %v1382_v23 = vmul.f32 %v1245_v19, %v1245_v19  ;;  %v1238_v25 = vmul.f32 %v1230_v20, %v2878_v21 }
 0x2f6   : > { %1250 = vst [vmem:[%s2713_s16 + $0x18] sm:$0xff] %v1242_v22  ;;  %2037 = vmatmul.mubr.f32.gmra.mxu0 %v1242_v22  ;;  %v1379_v11 = vmul.f32 %v1242_v22, %v1242_v22 }
 0x2f7   : > { %1396 = vadd.xlane.f32.xlu0 %v1382_v23  ;;  %v1246_v16 = vadd.f32 %v1238_v25, %v1222_v24 }
 0x2f8   : > { %1390 = vadd.xlane.f32.xlu1 %v1379_v11 }
 0x2f9   : > { %1254 = vst [vmem:[%s2713_s16 + $0x38] sm:$0xff] %v1246_v16  ;;  %2043 = vmatmul.mubr.f32.gmra.mxu1 %v1246_v16  ;;  %v1383_v18 = vmul.f32 %v1246_v16, %v1246_v16 }
 0x2fc   : > { %1394 = vadd.xlane.f32.xlu1 %v1381_v14 }
 0x300   : > { %1398 = vadd.xlane.f32.xlu1 %v1383_v18 }
 0x367   : > { %v1387_v27 = vpop.xlane.xlu1 %1386 }
 0x368   : > { %v1408_v21 = vadd.f32 %v1780_v26, %v1387_v27 }
 0x36b   : > { %v1385_v5 = vpop.xlane.xlu0 %1384 }
 0x36c   : > { %v1407_v31 = vadd.f32 %v1780_v26, %v1385_v5 }
 0x373   : > { %v1389_v37 = vpop.xlane.xlu0 %1388 }
 0x374   : > { %v1409_v1 = vadd.f32 %v1780_v26, %v1389_v37 }
 0x378   : > { %v1393_v46 = vpop.xlane.xlu0 %1392 }
 0x379   : > { %v1411_v41 = vadd.f32 %v1780_v26, %v1393_v46 }
 0x380   : > { %v1397_v4 = vpop.xlane.xlu0 %1396 }
 0x381   : > { %v1391_v34 = vpop.xlane.xlu1 %1390  ;;  %v1413_v0 = vadd.f32 %v1780_v26, %v1397_v4 }
 0x382   : > { %v1410_v60 = vadd.f32 %v1780_v26, %v1391_v34 }
 0x385   : > { %v1395_v43 = vpop.xlane.xlu1 %1394 }
 0x386   : > { %v1412_v49 = vadd.f32 %v1780_v26, %v1395_v43 }
 0x389   : > { %v1399_v61 = vpop.xlane.xlu1 %1398 }
 0x38a   : > { %v1414_v3 = vadd.f32 %v1780_v26, %v1399_v61 }
 0x3a1   : > { %v2035_v28 = vpop.f32.mrf.mxu0 }
 0x3a2   : > { %v1416_v29 = vmul.f32 2.0, %v2035_v28 }
 0x3a3   : > { %v1337_v30 = vpop.f32.mrf.mxu0 }
 0x3a4   : > { %v1424_v32 = vsub.f32 %v1408_v21, %v1416_v29  ;;  %v1415_v33 = vmul.f32 2.0, %v1337_v30 }
 0x3a6   : > { %v1432_v35 = vmax.f32 %v1424_v32, 0.0  ;;  %v1423_v36 = vsub.f32 %v1407_v31, %v1415_v33 }
 0x3a8   : > { %v1440_v38 = vmul.f32 5.0, %v1432_v35  ;;  %v1431_v39 = vmax.f32 %v1423_v36, 0.0 }
 0x3aa   : > { %v1448_v40 = vadd.f32 1.0, %v1440_v38  ;;  %v1439_v42 = vmul.f32 5.0, %v1431_v39 }
 0x3ac   : > { %2222 = vrcp.f32 %v1448_v40  ;;  %v1447_v45 = vadd.f32 1.0, %v1439_v42 }
 0x3ae   : > { %2224 = vrcp.f32 %v1447_v45  ;;  %v2041_v47 = vpop.f32.mrf.mxu1 }
 0x3af   : > { %v1420_v50 = vmul.f32 2.0, %v2041_v47 }
 0x3b0   : > { %v1357_v51 = vpop.f32.mrf.mxu1 }
 0x3b1   : > { %v1428_v53 = vsub.f32 %v1412_v49, %v1420_v50  ;;  %v1419_v44 = vmul.f32 2.0, %v1357_v51 }
 0x3b3   : > { %v1436_v54 = vmax.f32 %v1428_v53, 0.0  ;;  %v1427_v55 = vsub.f32 %v1411_v41, %v1419_v44 }
 0x3b5   : > { %v1444_v57 = vmul.f32 5.0, %v1436_v54  ;;  %v1435_v48 = vmax.f32 %v1427_v55, 0.0 }
 0x3b6   : > { %v2038_v52 = vpop.f32.mrf.mxu0 }
 0x3b7   : > { %v1452_v62 = vadd.f32 1.0, %v1444_v57  ;;  %v1443_v63 = vmul.f32 5.0, %v1435_v48  ;;  %v1418_v56 = vmul.f32 2.0, %v2038_v52 }
 0x3b8   : > { %v1347_v59 = vpop.f32.mrf.mxu0 }
 0x3b9   : > { %v2223_v2 = vpop.eup %2222  ;;  %2226 = vrcp.f32 %v1452_v62  ;;  %v1451_v6 = vadd.f32 1.0, %v1443_v63  ;;  %v1426_v7 = vsub.f32 %v1410_v60, %v1418_v56  ;;  %v1417_v58 = vmul.f32 2.0, %v1347_v59  ;;  %v2044_v8 = vpop.f32.mrf.mxu1 }
 0x3ba   : > { %2228 = vlog2.f32 %v2223_v2  ;;  %v1422_v10 = vmul.f32 2.0, %v2044_v8 }
 0x3bb   : > { %v2225_v12 = vpop.eup %2224  ;;  %2230 = vrcp.f32 %v1451_v6  ;;  %v1434_v13 = vmax.f32 %v1426_v7, 0.0  ;;  %v1425_v15 = vsub.f32 %v1409_v1, %v1417_v58  ;;  %v1367_v9 = vpop.f32.mrf.mxu1 }
 0x3bc   : > { %2232 = vlog2.f32 %v2225_v12  ;;  %v1430_v17 = vsub.f32 %v1414_v3, %v1422_v10  ;;  %v1421_v19 = vmul.f32 2.0, %v1367_v9 }
 0x3bd   : > { %v1442_v20 = vmul.f32 5.0, %v1434_v13  ;;  %v1433_v22 = vmax.f32 %v1425_v15, 0.0 }
 0x3be   : > { %v1438_v23 = vmax.f32 %v1430_v17, 0.0  ;;  %v1429_v24 = vsub.f32 %v1413_v0, %v1421_v19 }
 0x3bf   : > { %v1450_v25 = vadd.f32 1.0, %v1442_v20  ;;  %v1441_v11 = vmul.f32 5.0, %v1433_v22 }
 0x3c0   : > { %v1446_v16 = vmul.f32 5.0, %v1438_v23  ;;  %v1437_v14 = vmax.f32 %v1429_v24, 0.0 }
 0x3c1   : > { %2234 = vrcp.f32 %v1450_v25  ;;  %v1449_v18 = vadd.f32 1.0, %v1441_v11 }
 0x3c2   : > { %v1454_v27 = vadd.f32 1.0, %v1446_v16  ;;  %v1445_v5 = vmul.f32 5.0, %v1437_v14 }
 0x3c3   : > { %2236 = vrcp.f32 %v1449_v18 }
 0x3c4   : > { %2238 = vrcp.f32 %v1454_v27  ;;  %v1453_v28 = vadd.f32 1.0, %v1445_v5 }
 0x3c6   : > { %v2227_v21 = vpop.eup %2226  ;;  %2240 = vrcp.f32 %v1453_v28 }
 0x3c7   : > { %v2229_v26 = vpop.eup %2228  ;;  %2242 = vlog2.f32 %v2227_v21 }
 0x3c8   : > { %v2231_v29 = vpop.eup %2230  ;;  %v1474_v30 = vmul.f32 0.6931472, %v2229_v26 }
 0x3c9   : > { %v2233_v31 = vpop.eup %2232  ;;  %2244 = vlog2.f32 %v2231_v29 }
 0x3ca   : > { %v1488_v32 = vmul.f32 0.72, %v1474_v30  ;;  %v1472_v33 = vmul.f32 0.6931472, %v2233_v31 }
 0x3cc   : > { %v1497_v34 = vmul.f32 1.442695, %v1488_v32  ;;  %v1487_v35 = vmul.f32 0.72, %v1472_v33 }
 0x3ce   : > { %v2235_v36 = vpop.eup %2234  ;;  %2246 = vpow2.f32 %v1497_v34  ;;  %v1495_v37 = vmul.f32 1.442695, %v1487_v35 }
 0x3cf   : > { %2248 = vlog2.f32 %v2235_v36 }
 0x3d0   : > { %v2237_v38 = vpop.eup %2236  ;;  %2250 = vpow2.f32 %v1495_v37 }
 0x3d1   : > { %v2239_v39 = vpop.eup %2238  ;;  %2252 = vlog2.f32 %v2237_v38 }
 0x3d2   : > { %2254 = vlog2.f32 %v2239_v39 }
 0x3d3   : > { %v2241_v40 = vpop.eup %2240 }
 0x3d4   : > { %v2243_v42 = vpop.eup %2242  ;;  %2256 = vlog2.f32 %v2241_v40 }
 0x3d5   : > { %v1482_v45 = vmul.f32 0.6931472, %v2243_v42 }
 0x3d6   : > { %v2245_v43 = vpop.eup %2244 }
 0x3d7   : > { %v1480_v46 = vmul.f32 0.6931472, %v2245_v43  ;;  %v1492_v47 = vmul.f32 0.72, %v1482_v45 }
 0x3d9   : > { %v1491_v41 = vmul.f32 0.72, %v1480_v46  ;;  %v1505_v48 = vmul.f32 1.442695, %v1492_v47 }
 0x3db   : > { %v2247_v49 = vpop.eup %2246  ;;  %v1503_v63 = vmul.f32 1.442695, %v1491_v41  ;;  %2258 = vpow2.f32 %v1505_v48 }
 0x3dc   : > { %v2249_v50 = vpop.eup %2248  ;;  %v1512_v51 = vmul.f32 0.5, %v2247_v49 }
 0x3dd   : > { %v2251_v53 = vpop.eup %2250  ;;  %v1478_v44 = vmul.f32 0.6931472, %v2249_v50 }
 0x3de   : > { %v2253_v54 = vpop.eup %2252  ;;  %v1523_v55 = vsel %vm1519_vm2, %v1512_v51, 0.0  ;;  %v1511_v57 = vmul.f32 0.5, %v2251_v53 }
 0x3df   : > { %v2255_v52 = vpop.eup %2254  ;;  %1524 = vadd.xlane.f32.xlu1 %v1523_v55  ;;  %v1490_v60 = vmul.f32 0.72, %v1478_v44  ;;  %v1476_v61 = vmul.f32 0.6931472, %v2253_v54 }
 0x3e0   : > { %v1520_v62 = vsel %vm1519_vm2, %v1511_v57, 0.0  ;;  %v1486_v56 = vmul.f32 0.6931472, %v2255_v52 }
 0x3e1   : > { %v2257_v1 = vpop.eup %2256  ;;  %1521 = vadd.xlane.f32.xlu0 %v1520_v62  ;;  %v1501_v59 = vmul.f32 1.442695, %v1490_v60  ;;  %v1489_v2 = vmul.f32 0.72, %v1476_v61 }
 0x3e2   : > { %v1494_v4 = vmul.f32 0.72, %v1486_v56  ;;  %v1484_v6 = vmul.f32 0.6931472, %v2257_v1 }
 0x3e3   : > { %2260 = vpow2.f32 %v1501_v59  ;;  %v1499_v7 = vmul.f32 1.442695, %v1489_v2 }
 0x3e4   : > { %2262 = vpow2.f32 %v1503_v63  ;;  %v1509_v58 = vmul.f32 1.442695, %v1494_v4  ;;  %v1493_v8 = vmul.f32 0.72, %v1484_v6 }
 0x3e5   : > { %2264 = vpow2.f32 %v1499_v7 }
 0x3e6   : > { %v1507_v3 = vmul.f32 1.442695, %v1493_v8  ;;  %2266 = vpow2.f32 %v1509_v58 }
 0x3e8   : > { %2268 = vpow2.f32 %v1507_v3  ;;  %v2259_v10 = vpop.eup %2258 }
 0x3e9   : > { %v1516_v19 = vmul.f32 0.5, %v2259_v10 }
 0x3eb   : > { %v1535_v25 = vsel %vm1519_vm2, %v1516_v19, 0.0 }
 0x3f0   : > { %v2261_v12 = vpop.eup %2260 }
 0x3f1   : > { %v2263_v13 = vpop.eup %2262  ;;  %v1514_v15 = vmul.f32 0.5, %v2261_v12 }
 0x3f2   : > { %v2265_v9 = vpop.eup %2264  ;;  %v1515_v23 = vmul.f32 0.5, %v2263_v13 }
 0x3f3   : > { %v1529_v0 = vsel %vm1519_vm2, %v1514_v15, 0.0  ;;  %v1513_v17 = vmul.f32 0.5, %v2265_v9  ;;  %v2267_v20 = vpop.eup %2266 }
 0x3f4   : > { %1530 = vadd.xlane.f32.xlu1 %v1529_v0  ;;  %v1518_v11 = vmul.f32 0.5, %v2267_v20  ;;  %v1532_v16 = vsel %vm1519_vm2, %v1515_v23, 0.0 }
 0x3f5   : > { %v1526_v22 = vsel %vm1519_vm2, %v1513_v17, 0.0  ;;  %v2269_v24 = vpop.eup %2268 }
 0x3f6   : > { %1527 = vadd.xlane.f32.xlu0 %v1526_v22  ;;  %v1517_v14 = vmul.f32 0.5, %v2269_v24  ;;  %v1541_v18 = vsel %vm1519_vm2, %v1518_v11, 0.0 }
 0x3f8   : > { %1536 = vadd.xlane.f32.xlu1 %v1535_v25  ;;  %v1538_v27 = vsel %vm1519_vm2, %v1517_v14, 0.0 }
 0x3fa   : > { %1533 = vadd.xlane.f32.xlu0 %v1532_v16 }
 0x3fc   : > { %1542 = vadd.xlane.f32.xlu1 %v1541_v18 }
 0x3fe   : > { %1539 = vadd.xlane.f32.xlu0 %v1538_v27 }
 0x468   : > { %v1525_v5 = vpop.xlane.xlu1 %1524 }
 0x469   : > { %2270 = vrcp.f32 %v1525_v5 }
 0x46a   : > { %v1522_v28 = vpop.xlane.xlu0 %1521 }
 0x46b   : > { %2272 = vrcp.f32 %v1522_v28 }
 0x476   : > { %v2271_v21 = vpop.eup %2270 }
 0x477   : > { %v1553_v26 = vmul.f32 %v2271_v21, %v1512_v51 }
 0x478   : > { %v2273_v29 = vpop.eup %2272 }
 0x479   : > { %1561 = vst.msk [vmem:[%s2711_s26 + $0x8] sm:$0xff] %vm1519_vm2, %v1553_v26  ;;  %v1552_v30 = vmul.f32 %v2273_v29, %v1511_v57 }
 0x47b   : > { %1560 = vst.msk [vmem:[%s2711_s26] sm:$0xff] %vm1519_vm2, %v1552_v30 }
 0x47d   : > { %v1531_v31 = vpop.xlane.xlu1 %1530 }
 0x47e   : > { %2274 = vrcp.f32 %v1531_v31 }
 0x47f   : > { %v1528_v32 = vpop.xlane.xlu0 %1527 }
 0x480   : > { %2276 = vrcp.f32 %v1528_v32 }
 0x481   : > { %v1537_v33 = vpop.xlane.xlu1 %1536 }
 0x482   : > { %2278 = vrcp.f32 %v1537_v33 }
 0x483   : > { %v1534_v34 = vpop.xlane.xlu0 %1533 }
 0x484   : > { %2280 = vrcp.f32 %v1534_v34 }
 0x485   : > { %v1543_v35 = vpop.xlane.xlu1 %1542 }
 0x486   : > { %2282 = vrcp.f32 %v1543_v35 }
 0x487   : > { %v1540_v36 = vpop.xlane.xlu0 %1539 }
 0x488   : > { %2284 = vrcp.f32 %v1540_v36 }
 0x48b   : > { %v2275_v37 = vpop.eup %2274 }
 0x48c   : > { %v1555_v38 = vmul.f32 %v2275_v37, %v1514_v15 }
 0x48d   : > { %v2277_v39 = vpop.eup %2276 }
 0x48e   : > { %1563 = vst.msk [vmem:[%s2711_s26 + $0x18] sm:$0xff] %vm1519_vm2, %v1555_v38  ;;  %v1554_v40 = vmul.f32 %v2277_v39, %v1513_v17 }
 0x48f   : > { %v2279_v42 = vpop.eup %2278 }
 0x490   : > { %1562 = vst.msk [vmem:[%s2711_s26 + $0x10] sm:$0xff] %vm1519_vm2, %v1554_v40  ;;  %v1557_v43 = vmul.f32 %v2279_v42, %v1516_v19 }
 0x491   : > { %v2281_v45 = vpop.eup %2280 }
 0x492   : > { %1565 = vst.msk [vmem:[%s2711_s26 + $0x28] sm:$0xff] %vm1519_vm2, %v1557_v43  ;;  %v1556_v46 = vmul.f32 %v2281_v45, %v1515_v23 }
 0x493   : > { %v2283_v47 = vpop.eup %2282 }
 0x494   : > { %1564 = vst.msk [vmem:[%s2711_s26 + $0x20] sm:$0xff] %vm1519_vm2, %v1556_v46  ;;  %v1559_v49 = vmul.f32 %v2283_v47, %v1518_v11 }
 0x495   : > { %v2285_v50 = vpop.eup %2284 }
 0x496   : > { %1567 = vst.msk [vmem:[%s2711_s26 + $0x38] sm:$0xff] %vm1519_vm2, %v1559_v49  ;;  %v1558_v51 = vmul.f32 %v2285_v50, %v1517_v14 }
 0x498   : > { %1566 = vst.msk [vmem:[%s2711_s26 + $0x30] sm:$0xff] %vm1519_vm2, %v1558_v51 }
 0x499 PF: > { %s1788_s17 = sshll.u32 %s2454_s24, 10  ;;  %s3106_s9 = sld [smem:[#allocation28_spill]] }
 0x49a   : > { %s1587_s15 = sshll.u32 %s2713_s16, 4  ;;  %s2994_s29 = scalar_lea.sflag [#allocation6], %s479_s6  ;;  %s2990_s15 = int_to_ptr.vmem [resolvable:$true] %s1587_s15 }
 0x49b   : > { %s2342_s26 = scalar_lea.vmem %s2990_s15, 1024  ;;  %s2474_s24 = smov [#allocation9]  }
 0x49c   : > { %p2343_p6 = scmp.ne.s32.totalorder %s2990_s15, %s2342_s26  ;;  %s2346_s14 = sshll.u32 %s2474_s24, 4  ;;  %s2347_s14 = int_to_ptr.vmem [resolvable:$false] %s2346_s14 }
 0x49d   : > { %s2348_s30 = scalar_lea.vmem %s2347_s14, 2048  ;;  %p2349_p10 = scmp.lt.s32.totalorder %s2990_s15, %s2347_s14 }
 0x49e   : > { %p2344_p8 = pnand %p2343_p6, %p2619_p12  ;;  %p2350_p3 = scmp.lt.s32.totalorder %s2348_s30, %s2342_s26 }
 0x49f   : > { %s2987_s23 = scalar_lea.hbm %s3106_s9, %s1788_s17 }
 0x4a0   : > { %p2345_p9 = pneg %p2344_p8  ;;  %p2351_p11 = por %p2350_p3, %p2349_p10 }
 0x4a2   : > { %p2352_p13 = pnand %p2351_p11, %p2345_p9 }
 0x4a4   : > { %2355 = shalt.err (!%p2352_p13)
}
 0x4a5   : > { %s2356_s6 = scalar_lea.hbm %s2987_s23, 1024  ;;  %s2360_s10 = scalar_lea.hbm %s3106_s9, 4096 }
 0x4a6   : > { %p2357_p0 = scmp.ne.s32.totalorder %s2987_s23, %s2356_s6  ;;  %p2361_p7 = scmp.lt.s32.totalorder %s2987_s23, %s3106_s9 }
 0x4a7   : > { %p2362_p1 = scmp.lt.s32.totalorder %s2360_s10, %s2356_s6 }
 0x4a8   : > { %p2358_p4 = pnand %p2357_p0, %p2619_p12 }
 0x4a9   : > { %p2363_p6 = por %p2362_p1, %p2361_p7 }
 0x4aa   : > { %p2359_p5 = pneg %p2358_p4 }
 0x4ac   : > { %p2364_p8 = pnand %p2363_p6, %p2359_p5 }
 0x4ae   : > { %2367 = shalt.err (!%p2364_p8)
}
 0x4af   : > { %s2475_s0 = smov 128   ;;  %s2476_s25 = smov 8  }
 0x4b0   : > { %2081 = dma.vmem_to_hbm [thread:$0]  (%p2619_p12), %s2990_s15, 1024, %s2987_s23, %s2994_s29, %s2475_s0, %s2475_s0, %s2476_s25  }
 0x4b1 PF: > { %s3107_s28 = sld [smem:[#allocation13_spill]]  ;;  %p2095_p9 = scmp.ge.s32.totalorder %s2466_s27, 2 }
 0x4b3   : > { %p2091_p10 = pnand %p2095_p9, %p2632_p2 }
 0x4b5   : > { %p2092_p3 = pneg %p2091_p10 }
 0x4b7   : > { %s1606_s22 = sand.u32 1, %s3107_s28  }
 0x4b8   : > { %s1607_s19 = scalar_lea.sflag [#allocation6], %s1606_s22 }
 0x4b9   : > { %2421 = dma.done.wait (%p2092_p3), %s1607_s19, 1024  }
 0x4ba   : > { %2423 = vsyncadd (%p2092_p3), %s1607_s19, 4294966272  ;;  %s31_s27 = sadd.s32 1, %s2466_s27   ;;  %s3109_s26 = sld [smem:[#allocation14_spill]] }
 0x4bb   : > { %p28_p11 = scmp.ge.s32.totalorder %s31_s27, 10   ;;  %s3110_s19 = sld [smem:[#allocation20_spill]] }
 0x4bc   : > { %s3111_s23 = sld [smem:[#allocation15_spill]]  ;;  %s3117_s17 = smov %s2430_s18 }
 0x4bd   : > { %s3112_s22 = sld [smem:[#allocation21_spill]]  ;;  %s3119_s20 = smov %s2442_s21 }
 0x4be   : > { %s3113_s15 = sld [smem:[#allocation16_spill]] }
 0x4bf   : > { %s3114_s24 = sld [smem:[#allocation17_spill]] }
 0x4c0   : > { %s3115_s25 = sld [smem:[#allocation18_spill]]  ;;  %s3118_s18 = smov %s3109_s26 }
 0x4c1   : > { %s3116_s29 = sld [smem:[#allocation19_spill]] }
 0x4c2   : > { %s3120_s21 = smov %s3111_s23 }
 0x4c3   :  { %30 = sbr.rel (!%p28_p11) target bundleno = 18 (0x12), region = 141 }
 0x4c4   : > { %s3121_s23 = smov %s3113_s15 }
 0x4c7   : > { %s3122_s26 = smov %s3116_s29 }
 0x4c8   :  { %1620 = vsyncpa [#allocation5], 1 }
 0x4c9   :  { %1622 = vsyncpa [#allocation5 + $0x1], 1 }
 0x4ca   :  { %1623 = vsyncpa [#allocation8], 1 }
 0x4cb   :  { %1625 = vsyncpa [#allocation8 + $0x1], 1 }
 0x4cc   :  { %1626 = vsyncpa [#allocation6], 1 }
 0x4cd   :  { %1628 = vsyncpa [#allocation6 + $0x1], 1 }

</bundles_post_ra>
